<compile_context>
chip_gen: v6e
topology: v6e:2x2x1
jax: 0.10.0
libtpu: 0.0.40
codegen_flags: <defaults>
</compile_context>

<pallas_src>
import functools

import jax
import jax.numpy as jnp
from jax.experimental import pallas as pl
from jax.experimental.pallas import tpu as pltpu

BN_EPS = 1e-5
_VMEM_LIMIT = 32 * 1024 * 1024


# ----------------------------- fused kernel -------------------------------- #
def _fused_seperate_block_kernel(x_ref, w1_ref, w2_ref, p_ref, o_ref, y1_ref,
                                 *, k, width, n):
    # x_ref : (N, Cin, M)  f32   input, NCHW flattened over (H, W), M = H*W
    # w1_ref: (C, k*Cin)   bf16  conv1 weights, col index = kk*Cin + ci
    # w2_ref: (C, k*C)     bf16  conv2 weights, col index = kk*C  + ci
    # p_ref : (C, 6)       f32   columns = [b1, g1, beta1, b2, g2, beta2]
    # o_ref : (N, C, M)    f32   output (NCHW flattened)
    # y1_ref: (N, C, M)    f32   VMEM scratch: conv1+ReLU output (pre-BN1)
    c, m = o_ref.shape[1], o_ref.shape[2]
    lp = (k - 1) // 2

    b1 = p_ref[:, 0:1]
    g1 = p_ref[:, 1:2]
    bt1 = p_ref[:, 2:3]
    b2 = p_ref[:, 3:4]
    g2 = p_ref[:, 4:5]
    bt2 = p_ref[:, 5:6]

    # within-row W coordinate of every lane position (for conv1 edge masking)
    col = jax.lax.broadcasted_iota(jnp.int32, (1, m), 1) % width

    def shift_flat(a, s):
        """a[..., j] -> a[..., j+s], zero-filled out of range (static s)."""
        if s == 0:
            return a
        pad = jnp.zeros(a.shape[:-1] + (abs(s),), a.dtype)
        if s > 0:
            return jnp.concatenate([a[:, s:], pad], axis=-1)
        return jnp.concatenate([pad, a[:, :s]], axis=-1)

    def window_w(a, s):
        """Shift along W inside the flattened axis; mask row-crossing lanes."""
        sh = shift_flat(a, s)
        if s == 0:
            return sh
        valid = (col < width - s) if s > 0 else (col >= -s)
        return jnp.where(valid, sh, jnp.zeros_like(sh))

    inv_cnt = 1.0 / float(n * m)

    # -------- stage 1: Conv2d(Cin->C, (1,k), 'same') + bias + ReLU -------- #
    s1 = jnp.zeros((c, 1), jnp.float32)
    q1 = jnp.zeros((c, 1), jnp.float32)
    for i in range(n):                                   # static unroll (N small)
        xb = x_ref[i].astype(jnp.bfloat16)               # (Cin, M), cast hoisted
        win = jnp.concatenate([window_w(xb, kk - lp) for kk in range(k)],
                              axis=0)                    # (k*Cin, M)
        y = jnp.dot(w1_ref[...], win,
                    preferred_element_type=jnp.float32)  # (C, M) lane-dense
        y = jnp.maximum(y + b1, 0.0)
        y1_ref[i] = y
        s1 = s1 + jnp.sum(y, axis=1, keepdims=True)
        q1 = q1 + jnp.sum(y * y, axis=1, keepdims=True)

    mean1 = s1 * inv_cnt
    var1 = jnp.maximum(q1 * inv_cnt - mean1 * mean1, 0.0)
    sc1 = g1 * jax.lax.rsqrt(var1 + BN_EPS)
    sh1 = bt1 - mean1 * sc1

    # ------ stage 2: BN1 -> Conv2d(C->C, (k,1), 'same') + bias + ReLU ----- #
    s2 = jnp.zeros((c, 1), jnp.float32)
    q2 = jnp.zeros((c, 1), jnp.float32)
    for i in range(n):
        a = (y1_ref[i] * sc1 + sh1).astype(jnp.bfloat16)  # BN1 in f32, then cast
        win = jnp.concatenate(
            [shift_flat(a, (kk - lp) * width) for kk in range(k)],
            axis=0)                                       # (k*C, M)
        y = jnp.dot(w2_ref[...], win,
                    preferred_element_type=jnp.float32)   # (C, M)
        y = jnp.maximum(y + b2, 0.0)
        o_ref[i] = y                                      # pre-BN2, patched below
        s2 = s2 + jnp.sum(y, axis=1, keepdims=True)
        q2 = q2 + jnp.sum(y * y, axis=1, keepdims=True)

    mean2 = s2 * inv_cnt
    var2 = jnp.maximum(q2 * inv_cnt - mean2 * mean2, 0.0)
    sc2 = g2 * jax.lax.rsqrt(var2 + BN_EPS)
    sh2 = bt2 - mean2 * sc2

    # ----------------------------- stage 3: BN2 ---------------------------- #
    for i in range(n):
        o_ref[i] = o_ref[i] * sc2 + sh2


# ------------------------------- wrapper ------------------------------------ #
def seperate_block_forward(x_nchw, params, k):
    N, Cin, H, W = x_nchw.shape
    C = params["w1"].shape[0]
    M = H * W

    # NCHW stays NCHW; flattening (H, W) -> M is a free row-major reshape.
    x_flat = x_nchw.reshape(N, Cin, M).astype(jnp.float32)

    # conv1 weight (C, Cin, 1, k) -> (C, k*Cin) with col index kk*Cin + ci
    w1_mat = jnp.transpose(params["w1"][:, :, 0, :], (0, 2, 1)) \
                .reshape(C, k * Cin).astype(jnp.bfloat16)
    # conv2 weight (C, C, k, 1) -> (C, k*C) with col index kk*C + ci
    w2_mat = jnp.transpose(params["w2"][:, :, :, 0], (0, 2, 1)) \
                .reshape(C, k * C).astype(jnp.bfloat16)
    # per-channel scalars packed into one (C, 6) VMEM-resident table
    p = jnp.stack([params["b1"], params["g1"], params["beta1"],
                   params["b2"], params["g2"], params["beta2"]],
                  axis=1).astype(jnp.float32)

    # The fused kernel keeps the full working set resident in VMEM.
    vmem_bytes = (x_flat.size + 2 * N * C * M + p.size) * 4 \
        + (w1_mat.size + w2_mat.size) * 2
    assert vmem_bytes < 16 * 1024 * 1024, (
        "working set too large for the fused kernel")  # TODO(synk): tiled fallback

    kernel = functools.partial(_fused_seperate_block_kernel,
                               k=k, width=W, n=N)
    out = pl.pallas_call(
        kernel,
        out_shape=jax.ShapeDtypeStruct((N, C, M), jnp.float32),
        grid=(1,),
        in_specs=[
            pl.BlockSpec((N, Cin, M), lambda i: (0, 0, 0)),
            pl.BlockSpec((C, k * Cin), lambda i: (0, 0)),
            pl.BlockSpec((C, k * C), lambda i: (0, 0)),
            pl.BlockSpec((C, 6), lambda i: (0, 0)),
        ],
        out_specs=pl.BlockSpec((N, C, M), lambda i: (0, 0, 0)),
        scratch_shapes=[pltpu.VMEM((N, C, M), jnp.float32)],
        compiler_params=pltpu.CompilerParams(
            dimension_semantics=("arbitrary",),
            vmem_limit_bytes=_VMEM_LIMIT),
    )(x_flat, w1_mat, w2_mat, p)
    return out.reshape(N, C, H, W)


# ------------------------ pure-JAX reference check ------------------------- #
def _same_pad(k):
    total = k - 1
    left = total // 2
    return left, total - left


def _bn_ref(y, g, b):
    mean = jnp.mean(y, axis=(0, 1, 2), keepdims=True)
    var = jnp.mean(jnp.square(y - mean), axis=(0, 1, 2), keepdims=True)
    return (y - mean) * jax.lax.rsqrt(var + BN_EPS) * g + b


def _reference(x_nchw, params, k):
    lp, rp = _same_pad(k)
    x = jnp.transpose(x_nchw, (0, 2, 3, 1)).astype(jnp.float32)
    w1 = jnp.transpose(params["w1"], (2, 3, 1, 0))     # (1, k, Cin, C) HWIO
    y = jax.lax.conv_general_dilated(
        x, w1, (1, 1), [(0, 0), (lp, rp)],
        dimension_numbers=("NHWC", "HWIO", "NHWC"))
    y = jnp.maximum(y + params["b1"], 0.0)
    y = _bn_ref(y, params["g1"], params["beta1"])
    w2 = jnp.transpose(params["w2"], (2, 3, 1, 0))     # (k, 1, C, C) HWIO
    y = jax.lax.conv_general_dilated(
        y, w2, (1, 1), [(lp, rp), (0, 0)],
        dimension_numbers=("NHWC", "HWIO", "NHWC"))
    y = jnp.maximum(y + params["b2"], 0.0)
    y = _bn_ref(y, params["g2"], params["beta2"])
    return jnp.transpose(y, (0, 3, 1, 2))


# --------------------------------- main ------------------------------------ #
if __name__ == "__main__":
    in_channels, out_channels, kernel_size = 4, 32, 3
    N, H, W = 2, 16, 16

    key = jax.random.PRNGKey(0)
    keys = jax.random.split(key, 9)
    params = {
        # nn.Conv2d(in_channels, out_channels, (1, k)) weight / bias
        "w1": 0.1 * jax.random.normal(
            keys[0], (out_channels, in_channels, 1, kernel_size), jnp.float32),
        "b1": 0.1 * jax.random.normal(keys[1], (out_channels,), jnp.float32),
        # nn.BatchNorm2d(out_channels) affine params
        "g1": 1.0 + 0.1 * jax.random.normal(keys[2], (out_channels,), jnp.float32),
        "beta1": 0.1 * jax.random.normal(keys[3], (out_channels,), jnp.float32),
        # nn.Conv2d(out_channels, out_channels, (k, 1)) weight / bias
        "w2": 0.1 * jax.random.normal(
            keys[4], (out_channels, out_channels, kernel_size, 1), jnp.float32),
        "b2": 0.1 * jax.random.normal(keys[5], (out_channels,), jnp.float32),
        # nn.BatchNorm2d(out_channels) affine params
        "g2": 1.0 + 0.1 * jax.random.normal(keys[6], (out_channels,), jnp.float32),
        "beta2": 0.1 * jax.random.normal(keys[7], (out_channels,), jnp.float32),
    }

    x = jax.random.normal(keys[8], (N, in_channels, H, W), jnp.float32)  # NCHW

    fwd = jax.jit(lambda xx, pp: seperate_block_forward(xx, pp, kernel_size))
    out = jax.block_until_ready(fwd(x, params))
    ref = jax.block_until_ready(_reference(x, params, kernel_size))

    assert out.shape == (N, out_channels, H, W), out.shape
    assert bool(jnp.all(jnp.isfinite(out)))
    max_err = float(jnp.max(jnp.abs(out - ref)))
    assert max_err < 5e-2, f"mismatch vs reference, max abs err={max_err}"

    print("KERNEL_OK")
</pallas_src>

<mosaic_0001>
module attributes {stable_mosaic.version = 11 : i64} {
  func.func @_fused_seperate_block_kernel(%arg0: i32, %arg1: memref<2x4x256xf32, #tpu.memory_space<vmem>>, %arg2: memref<32x12xbf16, #tpu.memory_space<vmem>>, %arg3: memref<32x96xbf16, #tpu.memory_space<vmem>>, %arg4: memref<32x6xf32, #tpu.memory_space<vmem>>, %arg5: memref<2x32x256xf32, #tpu.memory_space<vmem>>, %arg6: memref<2x32x256xf32, #tpu.memory_space<vmem>>) attributes {dimension_semantics = [#tpu.dimension_semantics<arbitrary>], iteration_bounds = array<i64: 1>, scalar_prefetch = 0 : i64, scratch_operands = 1 : i64, tpu.core_type = #tpu.core_type<tc>, window_params = [{pipeline_mode = #tpu.pipeline_mode<synchronous>, transform_indices = @transform_0, window_bounds = array<i64: 2, 4, 256>}, {pipeline_mode = #tpu.pipeline_mode<synchronous>, transform_indices = @transform_1, window_bounds = array<i64: 32, 12>}, {pipeline_mode = #tpu.pipeline_mode<synchronous>, transform_indices = @transform_2, window_bounds = array<i64: 32, 96>}, {pipeline_mode = #tpu.pipeline_mode<synchronous>, transform_indices = @transform_3, window_bounds = array<i64: 32, 6>}, {pipeline_mode = #tpu.pipeline_mode<synchronous>, transform_indices = @transform_4, window_bounds = array<i64: 2, 32, 256>}]} {
    %c0 = arith.constant 0 : index
    %c0_0 = arith.constant 0 : index
    %0 = vector.load %arg4[%c0, %c0_0] : memref<32x6xf32, #tpu.memory_space<vmem>>, vector<32x1xf32>
    %c0_1 = arith.constant 0 : index
    %c1 = arith.constant 1 : index
    %1 = vector.load %arg4[%c0_1, %c1] : memref<32x6xf32, #tpu.memory_space<vmem>>, vector<32x1xf32>
    %c0_2 = arith.constant 0 : index
    %c2 = arith.constant 2 : index
    %2 = vector.load %arg4[%c0_2, %c2] : memref<32x6xf32, #tpu.memory_space<vmem>>, vector<32x1xf32>
    %c0_3 = arith.constant 0 : index
    %c3 = arith.constant 3 : index
    %3 = vector.load %arg4[%c0_3, %c3] : memref<32x6xf32, #tpu.memory_space<vmem>>, vector<32x1xf32>
    %c0_4 = arith.constant 0 : index
    %c4 = arith.constant 4 : index
    %4 = vector.load %arg4[%c0_4, %c4] : memref<32x6xf32, #tpu.memory_space<vmem>>, vector<32x1xf32>
    %c0_5 = arith.constant 0 : index
    %c5 = arith.constant 5 : index
    %5 = vector.load %arg4[%c0_5, %c5] : memref<32x6xf32, #tpu.memory_space<vmem>>, vector<32x1xf32>
    %6 = tpu.iota {dimensions = array<i32: 1>} : vector<1x256xi32>
    %c16_i32 = arith.constant 16 : i32
    %c0_i32 = arith.constant 0 : i32
    %7 = arith.cmpi eq, %c16_i32, %c0_i32 : i32
    %c1_i32 = arith.constant 1 : i32
    %8 = arith.select %7, %c1_i32, %c16_i32 : i32
    %9 = vector.broadcast %8 : i32 to vector<1x256xi32>
    %10 = arith.remsi %6, %9 : vector<1x256xi32>
    %c0_i32_6 = arith.constant 0 : i32
    %11 = vector.broadcast %c0_i32_6 : i32 to vector<1x256xi32>
    %12 = arith.cmpi ne, %10, %11 : vector<1x256xi32>
    %c0_i32_7 = arith.constant 0 : i32
    %13 = vector.broadcast %c0_i32_7 : i32 to vector<1x256xi32>
    %14 = arith.cmpi slt, %10, %13 : vector<1x256xi32>
    %c0_i32_8 = arith.constant 0 : i32
    %15 = arith.cmpi slt, %8, %c0_i32_8 : i32
    %16 = vector.broadcast %15 : i1 to vector<1x256xi1>
    %17 = vector.broadcast %16 : vector<1x256xi1> to vector<1x256xi1>
    %18 = arith.xori %14, %17 : vector<1x256xi1>
    %19 = arith.andi %18, %12 : vector<1x256xi1>
    %20 = vector.broadcast %8 : i32 to vector<1x256xi32>
    %21 = arith.addi %10, %20 : vector<1x256xi32>
    %22 = arith.select %19, %21, %10 : vector<1x256xi1>, vector<1x256xi32>
    %cst = arith.constant 0.000000e+00 : f32
    %23 = vector.broadcast %cst : f32 to vector<32x1xf32>
    %cst_9 = arith.constant 0.000000e+00 : f32
    %24 = vector.broadcast %cst_9 : f32 to vector<32x1xf32>
    %c0_10 = arith.constant 0 : index
    %c0_11 = arith.constant 0 : index
    %c0_12 = arith.constant 0 : index
    %25 = vector.load %arg1[%c0_10, %c0_11, %c0_12] : memref<2x4x256xf32, #tpu.memory_space<vmem>>, vector<1x4x256xf32>
    %26 = vector.shape_cast %25 : vector<1x4x256xf32> to vector<4x256xf32>
    %27 = arith.truncf %26 : vector<4x256xf32> to vector<4x256xbf16>
    %cst_13 = arith.constant 0.000000e+00 : bf16
    %28 = vector.broadcast %cst_13 : bf16 to vector<4x1xbf16>
    %29 = vector.extract_strided_slice %27 {offsets = [0, 0], sizes = [4, 255], strides = [1, 1]} : vector<4x256xbf16> to vector<4x255xbf16>
    %30 = tpu.concatenate %28, %29 in 1 : vector<4x1xbf16>, vector<4x255xbf16> -> vector<4x256xbf16>
    %c1_i32_14 = arith.constant 1 : i32
    %31 = vector.broadcast %c1_i32_14 : i32 to vector<1x256xi32>
    %32 = arith.cmpi sge, %22, %31 : vector<1x256xi32>
    %cst_15 = arith.constant 0.000000e+00 : bf16
    %33 = vector.broadcast %cst_15 : bf16 to vector<4x256xbf16>
    %34 = vector.shape_cast %32 : vector<1x256xi1> to vector<1x256xi1>
    %35 = vector.broadcast %34 : vector<1x256xi1> to vector<4x256xi1>
    %36 = arith.select %35, %30, %33 : vector<4x256xi1>, vector<4x256xbf16>
    %cst_16 = arith.constant 0.000000e+00 : bf16
    %37 = vector.broadcast %cst_16 : bf16 to vector<4x1xbf16>
    %38 = vector.extract_strided_slice %27 {offsets = [0, 1], sizes = [4, 255], strides = [1, 1]} : vector<4x256xbf16> to vector<4x255xbf16>
    %39 = tpu.concatenate %38, %37 in 1 : vector<4x255xbf16>, vector<4x1xbf16> -> vector<4x256xbf16>
    %c15_i32 = arith.constant 15 : i32
    %40 = vector.broadcast %c15_i32 : i32 to vector<1x256xi32>
    %41 = arith.cmpi slt, %22, %40 : vector<1x256xi32>
    %cst_17 = arith.constant 0.000000e+00 : bf16
    %42 = vector.broadcast %cst_17 : bf16 to vector<4x256xbf16>
    %43 = vector.shape_cast %41 : vector<1x256xi1> to vector<1x256xi1>
    %44 = vector.broadcast %43 : vector<1x256xi1> to vector<4x256xi1>
    %45 = arith.select %44, %39, %42 : vector<4x256xi1>, vector<4x256xbf16>
    %46 = tpu.concatenate %36, %27, %45 in 0 : vector<4x256xbf16>, vector<4x256xbf16>, vector<4x256xbf16> -> vector<12x256xbf16>
    %c0_18 = arith.constant 0 : index
    %c0_19 = arith.constant 0 : index
    %47 = vector.load %arg2[%c0_18, %c0_19] : memref<32x12xbf16, #tpu.memory_space<vmem>>, vector<32x12xbf16>
    %cst_20 = arith.constant dense<0.000000e+00> : vector<32x256xf32>
    %48 = tpu.matmul %47, %46, %cst_20 {dimension_numbers = #tpu.dot_dimension_numbers<[1], [0], [0], [1], [0, 0, 1, 1], [], []>} : vector<32x12xbf16>, vector<12x256xbf16>, vector<32x256xf32> -> vector<32x256xf32>
    %49 = vector.broadcast %0 : vector<32x1xf32> to vector<32x256xf32>
    %50 = arith.addf %48, %49 : vector<32x256xf32>
    %cst_21 = arith.constant 0.000000e+00 : f32
    %51 = vector.broadcast %cst_21 : f32 to vector<32x256xf32>
    %52 = arith.maximumf %50, %51 : vector<32x256xf32>
    %c0_22 = arith.constant 0 : index
    %c0_23 = arith.constant 0 : index
    %c0_24 = arith.constant 0 : index
    %53 = vector.load %arg6[%c0_22, %c0_23, %c0_24] : memref<2x32x256xf32, #tpu.memory_space<vmem>>, vector<1x32x256xf32>
    %54 = vector.shape_cast %53 : vector<1x32x256xf32> to vector<32x256xf32>
    %55 = vector.shape_cast %52 : vector<32x256xf32> to vector<1x32x256xf32>
    tpu.vector_store %arg6[%c0_22, %c0_23, %c0_24], %55 {strides = array<i32>} : memref<2x32x256xf32, #tpu.memory_space<vmem>>, vector<1x32x256xf32>,
    %cst_25 = arith.constant dense<0.000000e+00> : vector<32xf32>
    %56 = vector.multi_reduction <add>, %52, %cst_25 [1] : vector<32x256xf32> to vector<32xf32>
    %57 = vector.shape_cast %56 : vector<32xf32> to vector<32x1xf32>
    %58 = arith.addf %23, %57 : vector<32x1xf32>
    %59 = arith.mulf %52, %52 : vector<32x256xf32>
    %cst_26 = arith.constant dense<0.000000e+00> : vector<32xf32>
    %60 = vector.multi_reduction <add>, %59, %cst_26 [1] : vector<32x256xf32> to vector<32xf32>
    %61 = vector.shape_cast %60 : vector<32xf32> to vector<32x1xf32>
    %62 = arith.addf %24, %61 : vector<32x1xf32>
    %c1_27 = arith.constant 1 : index
    %c0_28 = arith.constant 0 : index
    %c0_29 = arith.constant 0 : index
    %63 = vector.load %arg1[%c1_27, %c0_28, %c0_29] : memref<2x4x256xf32, #tpu.memory_space<vmem>>, vector<1x4x256xf32>
    %64 = vector.shape_cast %63 : vector<1x4x256xf32> to vector<4x256xf32>
    %65 = arith.truncf %64 : vector<4x256xf32> to vector<4x256xbf16>
    %cst_30 = arith.constant 0.000000e+00 : bf16
    %66 = vector.broadcast %cst_30 : bf16 to vector<4x1xbf16>
    %67 = vector.extract_strided_slice %65 {offsets = [0, 0], sizes = [4, 255], strides = [1, 1]} : vector<4x256xbf16> to vector<4x255xbf16>
    %68 = tpu.concatenate %66, %67 in 1 : vector<4x1xbf16>, vector<4x255xbf16> -> vector<4x256xbf16>
    %c1_i32_31 = arith.constant 1 : i32
    %69 = vector.broadcast %c1_i32_31 : i32 to vector<1x256xi32>
    %70 = arith.cmpi sge, %22, %69 : vector<1x256xi32>
    %cst_32 = arith.constant 0.000000e+00 : bf16
    %71 = vector.broadcast %cst_32 : bf16 to vector<4x256xbf16>
    %72 = vector.shape_cast %70 : vector<1x256xi1> to vector<1x256xi1>
    %73 = vector.broadcast %72 : vector<1x256xi1> to vector<4x256xi1>
    %74 = arith.select %73, %68, %71 : vector<4x256xi1>, vector<4x256xbf16>
    %cst_33 = arith.constant 0.000000e+00 : bf16
    %75 = vector.broadcast %cst_33 : bf16 to vector<4x1xbf16>
    %76 = vector.extract_strided_slice %65 {offsets = [0, 1], sizes = [4, 255], strides = [1, 1]} : vector<4x256xbf16> to vector<4x255xbf16>
    %77 = tpu.concatenate %76, %75 in 1 : vector<4x255xbf16>, vector<4x1xbf16> -> vector<4x256xbf16>
    %c15_i32_34 = arith.constant 15 : i32
    %78 = vector.broadcast %c15_i32_34 : i32 to vector<1x256xi32>
    %79 = arith.cmpi slt, %22, %78 : vector<1x256xi32>
    %cst_35 = arith.constant 0.000000e+00 : bf16
    %80 = vector.broadcast %cst_35 : bf16 to vector<4x256xbf16>
    %81 = vector.shape_cast %79 : vector<1x256xi1> to vector<1x256xi1>
    %82 = vector.broadcast %81 : vector<1x256xi1> to vector<4x256xi1>
    %83 = arith.select %82, %77, %80 : vector<4x256xi1>, vector<4x256xbf16>
    %84 = tpu.concatenate %74, %65, %83 in 0 : vector<4x256xbf16>, vector<4x256xbf16>, vector<4x256xbf16> -> vector<12x256xbf16>
    %c0_36 = arith.constant 0 : index
    %c0_37 = arith.constant 0 : index
    %85 = vector.load %arg2[%c0_36, %c0_37] : memref<32x12xbf16, #tpu.memory_space<vmem>>, vector<32x12xbf16>
    %cst_38 = arith.constant dense<0.000000e+00> : vector<32x256xf32>
    %86 = tpu.matmul %85, %84, %cst_38 {dimension_numbers = #tpu.dot_dimension_numbers<[1], [0], [0], [1], [0, 0, 1, 1], [], []>} : vector<32x12xbf16>, vector<12x256xbf16>, vector<32x256xf32> -> vector<32x256xf32>
    %87 = vector.broadcast %0 : vector<32x1xf32> to vector<32x256xf32>
    %88 = arith.addf %86, %87 : vector<32x256xf32>
    %cst_39 = arith.constant 0.000000e+00 : f32
    %89 = vector.broadcast %cst_39 : f32 to vector<32x256xf32>
    %90 = arith.maximumf %88, %89 : vector<32x256xf32>
    %c1_40 = arith.constant 1 : index
    %c0_41 = arith.constant 0 : index
    %c0_42 = arith.constant 0 : index
    %91 = vector.load %arg6[%c1_40, %c0_41, %c0_42] : memref<2x32x256xf32, #tpu.memory_space<vmem>>, vector<1x32x256xf32>
    %92 = vector.shape_cast %91 : vector<1x32x256xf32> to vector<32x256xf32>
    %93 = vector.shape_cast %90 : vector<32x256xf32> to vector<1x32x256xf32>
    tpu.vector_store %arg6[%c1_40, %c0_41, %c0_42], %93 {strides = array<i32>} : memref<2x32x256xf32, #tpu.memory_space<vmem>>, vector<1x32x256xf32>,
    %cst_43 = arith.constant dense<0.000000e+00> : vector<32xf32>
    %94 = vector.multi_reduction <add>, %90, %cst_43 [1] : vector<32x256xf32> to vector<32xf32>
    %95 = vector.shape_cast %94 : vector<32xf32> to vector<32x1xf32>
    %96 = arith.addf %58, %95 : vector<32x1xf32>
    %97 = arith.mulf %90, %90 : vector<32x256xf32>
    %cst_44 = arith.constant dense<0.000000e+00> : vector<32xf32>
    %98 = vector.multi_reduction <add>, %97, %cst_44 [1] : vector<32x256xf32> to vector<32xf32>
    %99 = vector.shape_cast %98 : vector<32xf32> to vector<32x1xf32>
    %100 = arith.addf %62, %99 : vector<32x1xf32>
    %cst_45 = arith.constant 0.001953125 : f32
    %101 = vector.broadcast %cst_45 : f32 to vector<32x1xf32>
    %102 = arith.mulf %96, %101 : vector<32x1xf32>
    %cst_46 = arith.constant 0.001953125 : f32
    %103 = vector.broadcast %cst_46 : f32 to vector<32x1xf32>
    %104 = arith.mulf %100, %103 : vector<32x1xf32>
    %105 = arith.mulf %102, %102 : vector<32x1xf32>
    %106 = arith.subf %104, %105 : vector<32x1xf32>
    %cst_47 = arith.constant 0.000000e+00 : f32
    %107 = vector.broadcast %cst_47 : f32 to vector<32x1xf32>
    %108 = arith.maximumf %106, %107 : vector<32x1xf32>
    %cst_48 = arith.constant 9.99999974E-6 : f32
    %109 = vector.broadcast %cst_48 : f32 to vector<32x1xf32>
    %110 = arith.addf %108, %109 : vector<32x1xf32>
    %111 = math.rsqrt %110 : vector<32x1xf32>
    %112 = arith.mulf %1, %111 : vector<32x1xf32>
    %113 = arith.mulf %102, %112 : vector<32x1xf32>
    %114 = arith.subf %2, %113 : vector<32x1xf32>
    %cst_49 = arith.constant 0.000000e+00 : f32
    %115 = vector.broadcast %cst_49 : f32 to vector<32x1xf32>
    %cst_50 = arith.constant 0.000000e+00 : f32
    %116 = vector.broadcast %cst_50 : f32 to vector<32x1xf32>
    %c0_51 = arith.constant 0 : index
    %c0_52 = arith.constant 0 : index
    %c0_53 = arith.constant 0 : index
    %117 = vector.load %arg6[%c0_51, %c0_52, %c0_53] : memref<2x32x256xf32, #tpu.memory_space<vmem>>, vector<1x32x256xf32>
    %118 = vector.shape_cast %117 : vector<1x32x256xf32> to vector<32x256xf32>
    %119 = vector.broadcast %112 : vector<32x1xf32> to vector<32x256xf32>
    %120 = arith.mulf %118, %119 : vector<32x256xf32>
    %121 = vector.broadcast %114 : vector<32x1xf32> to vector<32x256xf32>
    %122 = arith.addf %120, %121 : vector<32x256xf32>
    %123 = arith.truncf %122 : vector<32x256xf32> to vector<32x256xbf16>
    %cst_54 = arith.constant 0.000000e+00 : bf16
    %124 = vector.broadcast %cst_54 : bf16 to vector<32x16xbf16>
    %125 = vector.extract_strided_slice %123 {offsets = [0, 0], sizes = [32, 240], strides = [1, 1]} : vector<32x256xbf16> to vector<32x240xbf16>
    %126 = tpu.concatenate %124, %125 in 1 : vector<32x16xbf16>, vector<32x240xbf16> -> vector<32x256xbf16>
    %cst_55 = arith.constant 0.000000e+00 : bf16
    %127 = vector.broadcast %cst_55 : bf16 to vector<32x16xbf16>
    %128 = vector.extract_strided_slice %123 {offsets = [0, 16], sizes = [32, 240], strides = [1, 1]} : vector<32x256xbf16> to vector<32x240xbf16>
    %129 = tpu.concatenate %128, %127 in 1 : vector<32x240xbf16>, vector<32x16xbf16> -> vector<32x256xbf16>
    %130 = tpu.concatenate %126, %123, %129 in 0 : vector<32x256xbf16>, vector<32x256xbf16>, vector<32x256xbf16> -> vector<96x256xbf16>
    %c0_56 = arith.constant 0 : index
    %c0_57 = arith.constant 0 : index
    %131 = vector.load %arg3[%c0_56, %c0_57] : memref<32x96xbf16, #tpu.memory_space<vmem>>, vector<32x96xbf16>
    %cst_58 = arith.constant dense<0.000000e+00> : vector<32x256xf32>
    %132 = tpu.matmul %131, %130, %cst_58 {dimension_numbers = #tpu.dot_dimension_numbers<[1], [0], [0], [1], [0, 0, 1, 1], [], []>} : vector<32x96xbf16>, vector<96x256xbf16>, vector<32x256xf32> -> vector<32x256xf32>
    %133 = vector.broadcast %3 : vector<32x1xf32> to vector<32x256xf32>
    %134 = arith.addf %132, %133 : vector<32x256xf32>
    %cst_59 = arith.constant 0.000000e+00 : f32
    %135 = vector.broadcast %cst_59 : f32 to vector<32x256xf32>
    %136 = arith.maximumf %134, %135 : vector<32x256xf32>
    %c0_60 = arith.constant 0 : index
    %c0_61 = arith.constant 0 : index
    %c0_62 = arith.constant 0 : index
    %137 = vector.load %arg5[%c0_60, %c0_61, %c0_62] : memref<2x32x256xf32, #tpu.memory_space<vmem>>, vector<1x32x256xf32>
    %138 = vector.shape_cast %137 : vector<1x32x256xf32> to vector<32x256xf32>
    %139 = vector.shape_cast %136 : vector<32x256xf32> to vector<1x32x256xf32>
    tpu.vector_store %arg5[%c0_60, %c0_61, %c0_62], %139 {strides = array<i32>} : memref<2x32x256xf32, #tpu.memory_space<vmem>>, vector<1x32x256xf32>,
    %cst_63 = arith.constant dense<0.000000e+00> : vector<32xf32>
    %140 = vector.multi_reduction <add>, %136, %cst_63 [1] : vector<32x256xf32> to vector<32xf32>
    %141 = vector.shape_cast %140 : vector<32xf32> to vector<32x1xf32>
    %142 = arith.addf %115, %141 : vector<32x1xf32>
    %143 = arith.mulf %136, %136 : vector<32x256xf32>
    %cst_64 = arith.constant dense<0.000000e+00> : vector<32xf32>
    %144 = vector.multi_reduction <add>, %143, %cst_64 [1] : vector<32x256xf32> to vector<32xf32>
    %145 = vector.shape_cast %144 : vector<32xf32> to vector<32x1xf32>
    %146 = arith.addf %116, %145 : vector<32x1xf32>
    %c1_65 = arith.constant 1 : index
    %c0_66 = arith.constant 0 : index
    %c0_67 = arith.constant 0 : index
    %147 = vector.load %arg6[%c1_65, %c0_66, %c0_67] : memref<2x32x256xf32, #tpu.memory_space<vmem>>, vector<1x32x256xf32>
    %148 = vector.shape_cast %147 : vector<1x32x256xf32> to vector<32x256xf32>
    %149 = vector.broadcast %112 : vector<32x1xf32> to vector<32x256xf32>
    %150 = arith.mulf %148, %149 : vector<32x256xf32>
    %151 = vector.broadcast %114 : vector<32x1xf32> to vector<32x256xf32>
    %152 = arith.addf %150, %151 : vector<32x256xf32>
    %153 = arith.truncf %152 : vector<32x256xf32> to vector<32x256xbf16>
    %cst_68 = arith.constant 0.000000e+00 : bf16
    %154 = vector.broadcast %cst_68 : bf16 to vector<32x16xbf16>
    %155 = vector.extract_strided_slice %153 {offsets = [0, 0], sizes = [32, 240], strides = [1, 1]} : vector<32x256xbf16> to vector<32x240xbf16>
    %156 = tpu.concatenate %154, %155 in 1 : vector<32x16xbf16>, vector<32x240xbf16> -> vector<32x256xbf16>
    %cst_69 = arith.constant 0.000000e+00 : bf16
    %157 = vector.broadcast %cst_69 : bf16 to vector<32x16xbf16>
    %158 = vector.extract_strided_slice %153 {offsets = [0, 16], sizes = [32, 240], strides = [1, 1]} : vector<32x256xbf16> to vector<32x240xbf16>
    %159 = tpu.concatenate %158, %157 in 1 : vector<32x240xbf16>, vector<32x16xbf16> -> vector<32x256xbf16>
    %160 = tpu.concatenate %156, %153, %159 in 0 : vector<32x256xbf16>, vector<32x256xbf16>, vector<32x256xbf16> -> vector<96x256xbf16>
    %c0_70 = arith.constant 0 : index
    %c0_71 = arith.constant 0 : index
    %161 = vector.load %arg3[%c0_70, %c0_71] : memref<32x96xbf16, #tpu.memory_space<vmem>>, vector<32x96xbf16>
    %cst_72 = arith.constant dense<0.000000e+00> : vector<32x256xf32>
    %162 = tpu.matmul %161, %160, %cst_72 {dimension_numbers = #tpu.dot_dimension_numbers<[1], [0], [0], [1], [0, 0, 1, 1], [], []>} : vector<32x96xbf16>, vector<96x256xbf16>, vector<32x256xf32> -> vector<32x256xf32>
    %163 = vector.broadcast %3 : vector<32x1xf32> to vector<32x256xf32>
    %164 = arith.addf %162, %163 : vector<32x256xf32>
    %cst_73 = arith.constant 0.000000e+00 : f32
    %165 = vector.broadcast %cst_73 : f32 to vector<32x256xf32>
    %166 = arith.maximumf %164, %165 : vector<32x256xf32>
    %c1_74 = arith.constant 1 : index
    %c0_75 = arith.constant 0 : index
    %c0_76 = arith.constant 0 : index
    %167 = vector.load %arg5[%c1_74, %c0_75, %c0_76] : memref<2x32x256xf32, #tpu.memory_space<vmem>>, vector<1x32x256xf32>
    %168 = vector.shape_cast %167 : vector<1x32x256xf32> to vector<32x256xf32>
    %169 = vector.shape_cast %166 : vector<32x256xf32> to vector<1x32x256xf32>
    tpu.vector_store %arg5[%c1_74, %c0_75, %c0_76], %169 {strides = array<i32>} : memref<2x32x256xf32, #tpu.memory_space<vmem>>, vector<1x32x256xf32>,
    %cst_77 = arith.constant dense<0.000000e+00> : vector<32xf32>
    %170 = vector.multi_reduction <add>, %166, %cst_77 [1] : vector<32x256xf32> to vector<32xf32>
    %171 = vector.shape_cast %170 : vector<32xf32> to vector<32x1xf32>
    %172 = arith.addf %142, %171 : vector<32x1xf32>
    %173 = arith.mulf %166, %166 : vector<32x256xf32>
    %cst_78 = arith.constant dense<0.000000e+00> : vector<32xf32>
    %174 = vector.multi_reduction <add>, %173, %cst_78 [1] : vector<32x256xf32> to vector<32xf32>
    %175 = vector.shape_cast %174 : vector<32xf32> to vector<32x1xf32>
    %176 = arith.addf %146, %175 : vector<32x1xf32>
    %cst_79 = arith.constant 0.001953125 : f32
    %177 = vector.broadcast %cst_79 : f32 to vector<32x1xf32>
    %178 = arith.mulf %172, %177 : vector<32x1xf32>
    %cst_80 = arith.constant 0.001953125 : f32
    %179 = vector.broadcast %cst_80 : f32 to vector<32x1xf32>
    %180 = arith.mulf %176, %179 : vector<32x1xf32>
    %181 = arith.mulf %178, %178 : vector<32x1xf32>
    %182 = arith.subf %180, %181 : vector<32x1xf32>
    %cst_81 = arith.constant 0.000000e+00 : f32
    %183 = vector.broadcast %cst_81 : f32 to vector<32x1xf32>
    %184 = arith.maximumf %182, %183 : vector<32x1xf32>
    %cst_82 = arith.constant 9.99999974E-6 : f32
    %185 = vector.broadcast %cst_82 : f32 to vector<32x1xf32>
    %186 = arith.addf %184, %185 : vector<32x1xf32>
    %187 = math.rsqrt %186 : vector<32x1xf32>
    %188 = arith.mulf %4, %187 : vector<32x1xf32>
    %189 = arith.mulf %178, %188 : vector<32x1xf32>
    %190 = arith.subf %5, %189 : vector<32x1xf32>
    %c0_83 = arith.constant 0 : index
    %c0_84 = arith.constant 0 : index
    %c0_85 = arith.constant 0 : index
    %191 = vector.load %arg5[%c0_83, %c0_84, %c0_85] : memref<2x32x256xf32, #tpu.memory_space<vmem>>, vector<1x32x256xf32>
    %192 = vector.shape_cast %191 : vector<1x32x256xf32> to vector<32x256xf32>
    %193 = vector.broadcast %188 : vector<32x1xf32> to vector<32x256xf32>
    %194 = arith.mulf %192, %193 : vector<32x256xf32>
    %195 = vector.broadcast %190 : vector<32x1xf32> to vector<32x256xf32>
    %196 = arith.addf %194, %195 : vector<32x256xf32>
    %c0_86 = arith.constant 0 : index
    %c0_87 = arith.constant 0 : index
    %c0_88 = arith.constant 0 : index
    %197 = vector.load %arg5[%c0_86, %c0_87, %c0_88] : memref<2x32x256xf32, #tpu.memory_space<vmem>>, vector<1x32x256xf32>
    %198 = vector.shape_cast %197 : vector<1x32x256xf32> to vector<32x256xf32>
    %199 = vector.shape_cast %196 : vector<32x256xf32> to vector<1x32x256xf32>
    tpu.vector_store %arg5[%c0_86, %c0_87, %c0_88], %199 {strides = array<i32>} : memref<2x32x256xf32, #tpu.memory_space<vmem>>, vector<1x32x256xf32>,
    %c1_89 = arith.constant 1 : index
    %c0_90 = arith.constant 0 : index
    %c0_91 = arith.constant 0 : index
    %200 = vector.load %arg5[%c1_89, %c0_90, %c0_91] : memref<2x32x256xf32, #tpu.memory_space<vmem>>, vector<1x32x256xf32>
    %201 = vector.shape_cast %200 : vector<1x32x256xf32> to vector<32x256xf32>
    %202 = vector.broadcast %188 : vector<32x1xf32> to vector<32x256xf32>
    %203 = arith.mulf %201, %202 : vector<32x256xf32>
    %204 = vector.broadcast %190 : vector<32x1xf32> to vector<32x256xf32>
    %205 = arith.addf %203, %204 : vector<32x256xf32>
    %c1_92 = arith.constant 1 : index
    %c0_93 = arith.constant 0 : index
    %c0_94 = arith.constant 0 : index
    %206 = vector.load %arg5[%c1_92, %c0_93, %c0_94] : memref<2x32x256xf32, #tpu.memory_space<vmem>>, vector<1x32x256xf32>
    %207 = vector.shape_cast %206 : vector<1x32x256xf32> to vector<32x256xf32>
    %208 = vector.shape_cast %205 : vector<32x256xf32> to vector<1x32x256xf32>
    tpu.vector_store %arg5[%c1_92, %c0_93, %c0_94], %208 {strides = array<i32>} : memref<2x32x256xf32, #tpu.memory_space<vmem>>, vector<1x32x256xf32>,
    return
  }
  func.func @transform_0(%arg0: i32) -> (i32, i32, i32) {
    %c0_i32 = arith.constant 0 : i32
    %c0_i32_0 = arith.constant 0 : i32
    %c0_i32_1 = arith.constant 0 : i32
    %c0_i32_2 = arith.constant 0 : i32
    return %c0_i32, %c0_i32_0, %c0_i32_1 : i32, i32, i32
  }
  func.func @transform_1(%arg0: i32) -> (i32, i32) {
    %c0_i32 = arith.constant 0 : i32
    %c0_i32_0 = arith.constant 0 : i32
    %c0_i32_1 = arith.constant 0 : i32
    return %c0_i32, %c0_i32_0 : i32, i32
  }
  func.func @transform_2(%arg0: i32) -> (i32, i32) {
    %c0_i32 = arith.constant 0 : i32
    %c0_i32_0 = arith.constant 0 : i32
    %c0_i32_1 = arith.constant 0 : i32
    return %c0_i32, %c0_i32_0 : i32, i32
  }
  func.func @transform_3(%arg0: i32) -> (i32, i32) {
    %c0_i32 = arith.constant 0 : i32
    %c0_i32_0 = arith.constant 0 : i32
    %c0_i32_1 = arith.constant 0 : i32
    return %c0_i32, %c0_i32_0 : i32, i32
  }
  func.func @transform_4(%arg0: i32) -> (i32, i32, i32) {
    %c0_i32 = arith.constant 0 : i32
    %c0_i32_0 = arith.constant 0 : i32
    %c0_i32_1 = arith.constant 0 : i32
    %c0_i32_2 = arith.constant 0 : i32
    return %c0_i32, %c0_i32_0, %c0_i32_1 : i32, i32, i32
  }
}

</mosaic_0001>

<bundles_post_ra>
// kernel: _lambda_.1
= control target key start
LH: loop header
LB: loop body
LE: loop exit
PB: predicated region body
PF: predicated region fallthrough
CT: control target
= control target key end

     0   :  { %v1259_v2 = vmov 0   ;;  %s1260_s19 = smov 127   ;;  %v24_v13 = vlaneseq  ;;  %vm95_vm6 = vcmask 1039360   ;;  %vm63_vm9 = vcmask 7168   ;;  %s1265_s10 = smov 16   ;;  %s1723_s0 = inlined_call_operand.vmem [shape: f32[2,4,256], index: 0, kind: input, shape index: {}]   ;;  %s1724_s1 = inlined_call_operand.vmem [shape: bf16[32,12], index: 1, kind: input, shape index: {}]   ;;  %s1725_s3 = inlined_call_operand.vmem [shape: f32[32,6], index: 3, kind: input, shape index: {}]   ;;  %s1726_s2 = inlined_call_operand.vmem [shape: bf16[32,96], index: 2, kind: input, shape index: {}]   ;;  %s1727_s4 = inlined_call_operand.vmem [shape: f32[2,32,256], index: 4, kind: output, shape index: {}]  }
   0x1   :  { %v1157_v0 = vld [vmem:[%s1723_s0 + $0x8] sm:$0xff]  ;;  %v51_v1 = vld [vmem:[%s1723_s0] sm:$0xff]  ;;  %218 = vmatprep.mubr.bf16.mxu0 %v1259_v2  ;;  %398 = vmatprep.mubr.bf16.mxu1 %v1259_v2  ;;  %s1261_s0 = smov 1   ;;  %v1327_v9 = vld [vmem:[%s1725_s3 + $0x18] sm:$0xff]  ;;  %vm128_vm10 = vcmask 1041408   ;;  %vm135_vm13 = vcmask 1043456  }
   0x2   :  { %v1302_v3 = vpack.c.bf16 %v1157_v0, %v1157_v0  ;;  %v1304_v4 = vpack.c.bf16 %v51_v1, %v51_v1  ;;  %v298_v5 = vcombine.high %v1157_v0, %v1157_v0  ;;  %v53_v6 = vcombine.high %v51_v1, %v51_v1  ;;  %1218 = vset.pattern.permute.xlu1 %v1259_v2  ;;  %v1332_v10 = vld [vmem:[%s1725_s3 + $0x10] sm:$0xff]  ;;  %v1339_v11 = vld [vmem:[%s1725_s3] sm:$0xff]  ;;  %v1344_v12 = vld [vmem:[%s1725_s3 + $0x8] sm:$0xff] }
   0x3   :  { %1217 = vset.pattern.permute.xlu0 %v1259_v2  ;;  %v25_v14 = vand.u32 127, %v24_v13  ;;  %v80_v18 = vshrl.u32 %v24_v13, 7  ;;  %vm181_vm14 = vcmask 1045504   ;;  %v1231_v60 = vld [vmem:[%s1724_s1] sm:$0xff]   ;;  %vm174_vm15 = vcmask 97280   ;;  %v1234_v13 = vld [vmem:[%s1724_s1 + $0x8] sm:$0xff]  }
   0x4   :  { %315 = vrot.lane.b32.xlu1 %v1302_v3, %s1260_s19  ;;  %91 = vrot.lane.b32.xlu0 %v1304_v4, %s1260_s19  ;;  %v1310_v7 = vpack.c.bf16 %v298_v5, %v298_v5  ;;  %v1312_v8 = vpack.c.bf16 %v53_v6, %v53_v6  ;;  %v122_v34 = vrot.slane %v1304_v4, 6  ;;  %v326_v44 = vrot.slane %v1302_v3, 6 }
   0x5   :  { %v26_v15 = vadd.s32 128, %v25_v14  ;;  %v31_v16 = vand.u32 15, %v25_v14  ;;  %v81_v19 = vsub.s32 0, %v80_v18  ;;  %v85_v20 = vsub.s32 4, %v80_v18 }
   0x6   :  { %v123_v33 = vrot.slane %v1312_v8, 6  ;;  %v327_v43 = vrot.slane %v1310_v7, 6 }
   0x7   :  { %v38_v17 = vand.u32 15, %v26_v15  ;;  %vm102_vm0 = vcmp.lt.s32.totalorder %v31_v16, 15  ;;  %vm71_vm3 = vcmp.ge.s32.totalorder %v31_v16, 1 }
   0x8   :  { %317 = vrot.lane.b32.xlu1 %v1310_v7, %s1260_s19  ;;  %93 = vrot.lane.b32.xlu0 %v1312_v8, %s1260_s19 }
   0x9   :  { %vm103_vm1 = vcmp.lt.s32.totalorder %v38_v17, 15  ;;  %vm72_vm4 = vcmp.ge.s32.totalorder %v38_v17, 1 }
   0xa   :  { %vm108_vm2 = vmpackc.low %vm103_vm1, %vm102_vm0  ;;  %vm632_vm0 = vcmask 916480   ;;  %vm612_vm1 = vcmask 130048  }
   0xb   :  { %v109_v21 = vsel %vm108_vm2, 65537, %v1259_v2  ;;  %vm77_vm5 = vmpackc.low %vm72_vm4, %vm71_vm3  ;;  %vm674_vm3 = vcmask 785408  }
   0xc   :  { %61 = vrot.lane.b32.xlu1 %v1312_v8, %s1261_s0  ;;  %59 = vrot.lane.b32.xlu0 %v1304_v4, %s1261_s0  ;;  %v113_v24 = vrot.slane %v109_v21, %v81_v19  ;;  %v117_v25 = vrot.slane %v109_v21, %v85_v20  ;;  %v78_v26 = vsel %vm77_vm5, 65537, %v1259_v2  ;;  %v1233_v8 = vld [vmem:[%s1724_s1 + $0x8] sm:$0xff]   ;;  %vm1533_vm2 = vmneg %vm612_vm1 }
   0xd   :  { %v82_v27 = vrot.slane %v78_v26, %v81_v19  ;;  %v86_v28 = vrot.slane %v78_v26, %v85_v20 }
   0xe   :  { %vm118_vm7 = vcmp.ne.s16.totalorder %v113_v24, 0  ;;  %vm119_vm8 = vcmp.ne.s16.totalorder %v117_v25, 0 }
   0xf   :  { %vm87_vm11 = vcmp.ne.s16.totalorder %v82_v27, 0  ;;  %vm88_vm12 = vcmp.ne.s16.totalorder %v86_v28, 0 }
  0x10   :  { %306 = vrot.lane.b32.xlu1 %v1310_v7, %s1261_s0  ;;  %304 = vrot.lane.b32.xlu0 %v1302_v3, %s1261_s0  ;;  %v1232_v7 = vld [vmem:[%s1724_s1] sm:$0xff]   ;;  %s1264_s1 = smov 112  }
  0x14   :  { %161 = vperm.xlu1 %1218, %v1327_v9   ;;  %156 = vperm.xlu0 %1217, %v1332_v10  }
  0x18   :  { %146 = vperm.xlu1 %1218, %v1339_v11   ;;  %151 = vperm.xlu0 %1217, %v1344_v12  }
  0x76   :  { %v316_v22 = vpop.permute.xlu1 %315  ;;  %v92_v23 = vpop.permute.xlu0 %91 }
  0x7a   :  { %v318_v29 = vpop.permute.xlu1 %317  ;;  %v94_v30 = vpop.permute.xlu0 %93 }
  0x7b   :  { %v96_v31 = vsel %vm95_vm6, %v92_v23, %v94_v30  ;;  %v100_v32 = vsel %vm95_vm6, %v94_v30, 0  ;;  %v319_v37 = vsel %vm95_vm6, %v316_v22, %v318_v29  ;;  %v322_v38 = vsel %vm95_vm6, %v318_v29, 0 }
  0x7c   :  { %v120_v35 = vsel %vm118_vm7, %v96_v31, 0  ;;  %v121_v36 = vsel %vm119_vm8, %v100_v32, 0  ;;  %v324_v49 = vsel %vm118_vm7, %v319_v37, 0  ;;  %v325_v50 = vsel %vm119_vm8, %v322_v38, 0 }
  0x7d   :  { %v126_v45 = vrot.slane %v120_v35, 4  ;;  %v127_v46 = vrot.slane %v121_v36, 4  ;;  %v330_v61 = vrot.slane %v324_v49, 4  ;;  %v331_v62 = vrot.slane %v325_v50, 4 }
  0x7e   :  { %v62_v39 = vpop.permute.xlu1 %61  ;;  %v60_v40 = vpop.permute.xlu0 %59 }
  0x7f   :  { %v64_v41 = vsel %vm63_vm9, %v60_v40, %v62_v39  ;;  %v69_v42 = vsel %vm63_vm9, 0, %v60_v40 }
  0x80   :  { %v89_v47 = vsel %vm87_vm11, %v69_v42, 0  ;;  %v90_v48 = vsel %vm88_vm12, %v64_v41, 0 }
  0x81   :  { %v134_v51 = vsel %vm128_vm10, %v90_v48, %v123_v33  ;;  %v131_v52 = vsel %vm128_vm10, %v89_v47, %v122_v34 }
  0x82   :  { %v307_v53 = vpop.permute.xlu1 %306  ;;  %v305_v54 = vpop.permute.xlu0 %304  ;;  %v139_v55 = vsel %vm135_vm13, %v134_v51, %v127_v46  ;;  %v137_v56 = vsel %vm135_vm13, %v131_v52, %v126_v45 }
  0x83   :  { %v308_v57 = vsel %vm63_vm9, %v305_v54, %v307_v53  ;;  %v311_v58 = vsel %vm63_vm9, 0, %v305_v54  ;;  %1154 = vmatprep.subr.msk.bf16.mxu0 %vm181_vm14, %v139_v55  ;;  %v182_v59 = vsel %vm181_vm14, %v137_v56, 0 }
  0x84   :  { %v313_v63 = vsel %vm87_vm11, %v311_v58, 0  ;;  %v314_v0 = vsel %vm88_vm12, %v308_v57, 0  ;;  %201 = vmatpush1.bf16.msra.mxu0 %v182_v59 }
  0x85   :  { %v337_v1 = vsel %vm128_vm10, %v314_v0, %v327_v43  ;;  %v334_v3 = vsel %vm128_vm10, %v313_v63, %v326_v44 }
  0x86   :  { %v341_v4 = vsel %vm135_vm13, %v337_v1, %v331_v62  ;;  %v339_v5 = vsel %vm135_vm13, %v334_v3, %v330_v61 }
  0x87   :  { %1155 = vmatmul.mubr.msk.bf16.vlgmr.msra.gmra.mxu0 %vm174_vm15, %v1231_v60  ;;  %1160 = vmatprep.subr.msk.bf16.mxu1 %vm181_vm14, %v341_v4  ;;  %v362_v6 = vsel %vm181_vm14, %v339_v5, 0 }
  0x88   :  { %381 = vmatpush1.bf16.msra.mxu1 %v362_v6  ;;  %228 = vmatprep.mubr.bf16.mxu0 %v1259_v2 }
  0x8b   :  { %1161 = vmatmul.mubr.msk.bf16.vlgmr.msra.gmra.mxu1 %vm174_vm15, %v1232_v7 }
  0x8c   :  { %408 = vmatprep.mubr.bf16.mxu1 %v1259_v2 }
  0x8f   :  { %1156 = vmatmul.mubr.msk.bf16.gmra.mxu0 %vm174_vm15, %v1233_v8  ;;  %v162_v14 = vpop.permute.xlu1 %161  ;;  %v157_v15 = vpop.permute.xlu0 %156 }
  0x90   :  { %713 = vmatprep.mubr.bf16.mxu0 %v1259_v2 }
  0x93   :  { %1162 = vmatmul.mubr.msk.bf16.gmra.mxu1 %vm174_vm15, %v1234_v13  ;;  %v147_v16 = vpop.permute.xlu1 %146  ;;  %v152_v23 = vpop.permute.xlu0 %151 }
  0x94   :  { %910 = vmatprep.mubr.bf16.mxu1 %v1259_v2 }
 0x147   :  { %v220_v17 = vpop.f32.mrf.mxu0 }
 0x148   :  { %v221_v18 = vadd.f32 %v220_v17, %v147_v16 }
 0x149   :  { %v222_v19 = vpop.f32.mrf.mxu0 }
 0x14a   :  { %v223_v20 = vadd.f32 %v222_v19, %v147_v16  ;;  %v1404_v25 = vmax.f32 %v221_v18, 0.0 }
 0x14b   :  { %v224_v21 = vpop.f32.mrf.mxu0  ;;  %v400_v22 = vpop.f32.mrf.mxu1 }
 0x14c   :  { %v1402_v24 = vmax.f32 %v223_v20, 0.0  ;;  %v225_v26 = vadd.f32 %v224_v21, %v152_v23  ;;  %v401_v27 = vadd.f32 %v400_v22, %v147_v16 }
 0x14d   :  { %v226_v28 = vpop.f32.mrf.mxu0  ;;  %v402_v29 = vpop.f32.mrf.mxu1 }
 0x14e   :  { %v227_v30 = vadd.f32 %v226_v28, %v152_v23  ;;  %v403_v31 = vadd.f32 %v402_v29, %v147_v16  ;;  %v255_v34 = vadd.f32 %v1402_v24, %v1404_v25  ;;  %v1412_v37 = vmax.f32 %v225_v26, 0.0 }
 0x14f   :  { %v230_v32 = vpop.f32.mrf.mxu0  ;;  %v404_v33 = vpop.f32.mrf.mxu1  ;;  %v1414_v38 = vmax.f32 %v401_v27, 0.0  ;;  %v272_v28 = vmul.f32 %v1402_v24, %v1402_v24 }
 0x150   :  { %v1408_v35 = vmax.f32 %v227_v30, 0.0  ;;  %v1410_v36 = vmax.f32 %v403_v31, 0.0  ;;  %v405_v39 = vadd.f32 %v404_v33, %v152_v23  ;;  %256 = vadd.xlane.f32.xlu0 %v255_v34  ;;  %v231_v47 = vadd.f32 %v230_v32, %v157_v15 }
 0x151   :  { %v232_v40 = vpop.f32.mrf.mxu0  ;;  %v406_v41 = vpop.f32.mrf.mxu1  ;;  %v273_v8 = vmul.f32 %v1412_v37, %v1412_v37  ;;  %v271_v31 = vmul.f32 %v1404_v25, %v1404_v25 }
 0x152   :  { %v233_v42 = vadd.f32 %v232_v40, %v157_v15  ;;  %v407_v43 = vadd.f32 %v406_v41, %v152_v23  ;;  %v258_v45 = vadd.f32 %v1408_v35, %v1412_v37  ;;  %v436_v46 = vadd.f32 %v1410_v36, %v1414_v38 }
 0x153   :  { %v410_v44 = vpop.f32.mrf.mxu1  ;;  %v234_v49 = vpop.f32.mrf.mxu0  ;;  %v1422_v51 = vmax.f32 %v405_v39, 0.0  ;;  %v1428_v57 = vmax.f32 %v231_v47, 0.0  ;;  %v274_v4 = vmul.f32 %v1408_v35, %v1408_v35  ;;  %v279_v33 = vadd.f32 %v272_v28, %v271_v31 }
 0x154   :  { %v1420_v48 = vmax.f32 %v407_v43, 0.0  ;;  %v411_v50 = vadd.f32 %v410_v44, %v157_v15  ;;  %259 = vadd.xlane.f32.xlu1 %v258_v45  ;;  %437 = vadd.xlane.f32.xlu0 %v436_v46  ;;  %v1424_v53 = vmax.f32 %v233_v42, 0.0  ;;  %v235_v6 = vadd.f32 %v234_v49, %v162_v14 }
 0x155   :  { %v412_v52 = vpop.f32.mrf.mxu1  ;;  %v236_v59 = vpop.f32.mrf.mxu0  ;;  %v275_v5 = vmul.f32 %v1428_v57, %v1428_v57  ;;  %v282_v18 = vadd.f32 %v274_v4, %v273_v8  ;;  %v453_v34 = vmul.f32 %v1410_v36, %v1410_v36  ;;  %v452_v41 = vmul.f32 %v1414_v38, %v1414_v38 }
 0x156   :  { %v413_v54 = vadd.f32 %v412_v52, %v157_v15  ;;  %v439_v56 = vadd.f32 %v1420_v48, %v1422_v51  ;;  %v1430_v58 = vmax.f32 %v411_v50, 0.0  ;;  %v276_v63 = vmul.f32 %v1424_v53, %v1424_v53 }
 0x157   :  { %v414_v55 = vpop.f32.mrf.mxu1  ;;  %v237_v0 = vadd.f32 %v236_v59, %v162_v14  ;;  %v261_v3 = vadd.f32 %v1424_v53, %v1428_v57  ;;  %v1454_v20 = vmax.f32 %v235_v6, 0.0  ;;  %v455_v40 = vmul.f32 %v1420_v48, %v1420_v48 }
 0x158   :  { %v1432_v60 = vmax.f32 %v413_v54, 0.0  ;;  %440 = vadd.xlane.f32.xlu1 %v439_v56  ;;  %v415_v7 = vadd.f32 %v414_v55, %v162_v14  ;;  %v285_v13 = vadd.f32 %v276_v63, %v275_v5  ;;  %v456_v19 = vmul.f32 %v1430_v58, %v1430_v58 }
 0x159   :  { %v416_v61 = vpop.f32.mrf.mxu1  ;;  %v1448_v16 = vmax.f32 %v237_v0, 0.0  ;;  %v277_v26 = vmul.f32 %v1454_v20, %v1454_v20  ;;  %v454_v42 = vmul.f32 %v1422_v51, %v1422_v51  ;;  %v460_v43 = vadd.f32 %v453_v34, %v452_v41 }
 0x15a   :  { %v442_v62 = vadd.f32 %v1432_v60, %v1430_v58  ;;  %v417_v1 = vadd.f32 %v416_v61, %v162_v14  ;;  %v457_v15 = vmul.f32 %v1432_v60, %v1432_v60  ;;  %v1456_v14 = vmax.f32 %v415_v7, 0.0 }
 0x15b   :  { %v278_v23 = vmul.f32 %v1448_v16, %v1448_v16  ;;  %v264_v27 = vadd.f32 %v1448_v16, %v1454_v20  ;;  %v463_v44 = vadd.f32 %v455_v40, %v454_v42  ;;  %v1262_v45 = vmov 1  }
 0x15c   :  { %443 = vadd.xlane.f32.xlu0 %v442_v62  ;;  %262 = vadd.xlane.f32.xlu1 %v261_v3  ;;  %v1450_v17 = vmax.f32 %v417_v1, 0.0  ;;  %v466_v21 = vadd.f32 %v457_v15, %v456_v19  ;;  %v458_v32 = vmul.f32 %v1456_v14, %v1456_v14 }
 0x15d   :  { %v288_v29 = vadd.f32 %v278_v23, %v277_v26  ;;  %1219 = vset.pattern.permute.xlu1 %v1262_v45  ;;  %1220 = vset.pattern.permute.xlu0 %v1262_v45 }
 0x15e   :  { %v445_v22 = vadd.f32 %v1450_v17, %v1456_v14  ;;  %v459_v30 = vmul.f32 %v1450_v17, %v1450_v17 }
 0x160   :  { %286 = vadd.xlane.f32.xlu0 %v285_v13  ;;  %283 = vadd.xlane.f32.xlu1 %v282_v18  ;;  %v469_v39 = vadd.f32 %v459_v30, %v458_v32 }
 0x164   :  { %467 = vadd.xlane.f32.xlu0 %v466_v21  ;;  %446 = vadd.xlane.f32.xlu1 %v445_v22 }
 0x168   :  { %265 = vadd.xlane.f32.xlu0 %v264_v27  ;;  %289 = vadd.xlane.f32.xlu1 %v288_v29 }
 0x16c   :  { %280 = vadd.xlane.f32.xlu0 %v279_v33  ;;  %470 = vadd.xlane.f32.xlu1 %v469_v39 }
 0x170   :  { %461 = vadd.xlane.f32.xlu0 %v460_v43  ;;  %464 = vadd.xlane.f32.xlu1 %v463_v44 }
 0x1d9   :  { %v257_v46 = vpop.xlane.xlu0 %256 }
 0x1dd   :  { %v260_v47 = vpop.xlane.xlu1 %259  ;;  %v438_v49 = vpop.xlane.xlu0 %437 }
 0x1de   :  { %v448_v8 = vadd.f32 %v438_v49, %v257_v46 }
 0x1e0   :  { %v476_v26 = vmul.f32 0.001953125, %v448_v8 }
 0x1e1   :  { %v441_v50 = vpop.xlane.xlu1 %440 }
 0x1e2   :  { %v449_v15 = vadd.f32 %v441_v50, %v260_v47  ;;  %v484_v39 = vmul.f32 %v476_v26, %v476_v26 }
 0x1e4   :  { %v477_v27 = vmul.f32 0.001953125, %v449_v15 }
 0x1e5   :  { %v444_v52 = vpop.xlane.xlu0 %443  ;;  %v263_v54 = vpop.xlane.xlu1 %262 }
 0x1e6   :  { %v450_v55 = vadd.f32 %v444_v52, %v263_v54  ;;  %v485_v41 = vmul.f32 %v477_v27, %v477_v27 }
 0x1e8   :  { %v478_v61 = vmul.f32 0.001953125, %v450_v55 }
 0x1e9   :  { %v287_v56 = vpop.xlane.xlu0 %286  ;;  %v284_v59 = vpop.xlane.xlu1 %283 }
 0x1ea   :  { %v486_v1 = vmul.f32 %v478_v61, %v478_v61 }
 0x1ed   :  { %v468_v62 = vpop.xlane.xlu0 %467  ;;  %v447_v63 = vpop.xlane.xlu1 %446 }
 0x1ee   :  { %v474_v0 = vadd.f32 %v468_v62, %v287_v56 }
 0x1f0   :  { %v482_v3 = vmul.f32 0.001953125, %v474_v0 }
 0x1f1   :  { %v266_v4 = vpop.xlane.xlu0 %265  ;;  %v290_v6 = vpop.xlane.xlu1 %289 }
 0x1f2   :  { %v490_v5 = vsub.f32 %v482_v3, %v486_v1  ;;  %v451_v7 = vadd.f32 %v447_v63, %v266_v4 }
 0x1f4   :  { %v494_v13 = vmax.f32 %v490_v5, 0.0  ;;  %v479_v18 = vmul.f32 0.001953125, %v451_v7 }
 0x1f5   :  { %v281_v19 = vpop.xlane.xlu0 %280  ;;  %v471_v22 = vpop.xlane.xlu1 %470 }
 0x1f6   :  { %v498_v21 = vadd.f32 1e-05, %v494_v13  ;;  %v475_v23 = vadd.f32 %v471_v22, %v290_v6  ;;  %v487_v28 = vmul.f32 %v479_v18, %v479_v18 }
 0x1f8   :  { %1239 = vrsqrt.f32 %v498_v21  ;;  %v483_v29 = vmul.f32 0.001953125, %v475_v23 }
 0x1f9   :  { %v462_v30 = vpop.xlane.xlu0 %461  ;;  %v465_v31 = vpop.xlane.xlu1 %464 }
 0x1fa   :  { %v472_v32 = vadd.f32 %v462_v30, %v281_v19  ;;  %v491_v33 = vsub.f32 %v483_v29, %v487_v28  ;;  %v473_v34 = vadd.f32 %v465_v31, %v284_v59 }
 0x1fc   :  { %v480_v40 = vmul.f32 0.001953125, %v472_v32  ;;  %v495_v42 = vmax.f32 %v491_v33, 0.0  ;;  %v481_v43 = vmul.f32 0.001953125, %v473_v34 }
 0x1fe   :  { %v488_v44 = vsub.f32 %v480_v40, %v484_v39  ;;  %v499_v45 = vadd.f32 1e-05, %v495_v42  ;;  %v489_v46 = vsub.f32 %v481_v43, %v485_v41 }
 0x200   :  { %v492_v47 = vmax.f32 %v488_v44, 0.0  ;;  %1241 = vrsqrt.f32 %v499_v45  ;;  %v493_v49 = vmax.f32 %v489_v46, 0.0 }
 0x202   :  { %v496_v50 = vadd.f32 1e-05, %v492_v47  ;;  %v497_v52 = vadd.f32 1e-05, %v493_v49 }
 0x204   :  { %1243 = vrsqrt.f32 %v496_v50 }
 0x205   :  { %v1240_v54 = vpop.eup %1239  ;;  %1245 = vrsqrt.f32 %v497_v52 }
 0x206   :  { %v506_v55 = vmul.f32 %v1240_v54, %v1332_v10 }
 0x208   :  { %v510_v56 = vmul.f32 %v506_v55, %v478_v61  ;;  %v1263_v61 = vmov 2  }
 0x20a   :  { %520 = vrot.lane.b32.xlu0 %v510_v56, %s1261_s0 }
 0x20d   :  { %v1242_v59 = vpop.eup %1241 }
 0x20e   :  { %v507_v62 = vmul.f32 %v1242_v59, %v1327_v9 }
 0x210   :  { %v511_v0 = vmul.f32 %v507_v62, %v479_v18 }
 0x211   :  { %v1244_v63 = vpop.eup %1243 }
 0x212   :  { %v1246_v1 = vpop.eup %1245  ;;  %v504_v3 = vmul.f32 %v1244_v63, %v1339_v11  ;;  %522 = vrot.lane.b32.xlu1 %v511_v0, %s1261_s0 }
 0x213   :  { %v505_v4 = vmul.f32 %v1246_v1, %v1344_v12 }
 0x214   :  { %v508_v5 = vmul.f32 %v504_v3, %v476_v26 }
 0x215   :  { %v509_v6 = vmul.f32 %v505_v4, %v477_v27 }
 0x216   :  { %516 = vrot.lane.b32.xlu1 %v508_v5, %s1261_s0 }
 0x217   :  { %518 = vrot.lane.b32.xlu0 %v509_v6, %s1261_s0 }
 0x21a   :  { %552 = vperm.xlu1 %1219, %v506_v55  }
 0x21b   :  { %557 = vperm.xlu0 %1220, %v507_v62  }
 0x21e   :  { %547 = vperm.xlu1 %1219, %v505_v4  }
 0x21f   :  { %542 = vperm.xlu0 %1220, %v504_v3  }
 0x222   :  { %1222 = vset.pattern.permute.xlu1 %v1263_v61 }
 0x223   :  { %1221 = vset.pattern.permute.xlu0 %v1263_v61 }
 0x27c   :  { %v521_v7 = vpop.permute.xlu0 %520 }
 0x27d   :  { %v530_v8 = vsub.f32 %v1332_v10, %v521_v7 }
 0x27f   :  { %580 = vperm.xlu1 %1222, %v530_v8  }
 0x284   :  { %v523_v13 = vpop.permute.xlu1 %522 }
 0x285   :  { %v531_v15 = vsub.f32 %v1327_v9, %v523_v13 }
 0x287   :  { %585 = vperm.xlu1 %1222, %v531_v15  }
 0x288   :  { %v517_v18 = vpop.permute.xlu1 %516 }
 0x289   :  { %v519_v19 = vpop.permute.xlu0 %518  ;;  %v528_v21 = vsub.f32 %v1339_v11, %v517_v18 }
 0x28a   :  { %v529_v22 = vsub.f32 %v1344_v12, %v519_v19 }
 0x28b   :  { %570 = vperm.xlu0 %1221, %v528_v21  }
 0x28c   :  { %575 = vperm.xlu1 %1222, %v529_v22  }
 0x295   :  { %v553_v23 = vpop.permute.xlu1 %552 }
 0x296   :  { %v558_v27 = vpop.permute.xlu0 %557  ;;  %v564_v47 = vmul.f32 %v553_v23, %v1428_v57  ;;  %v802_v57 = vmul.f32 %v553_v23, %v1430_v58 }
 0x297   :  { %v566_v43 = vmul.f32 %v558_v27, %v1454_v20  ;;  %v567_v44 = vmul.f32 %v558_v27, %v1448_v16  ;;  %v805_v52 = vmul.f32 %v558_v27, %v1450_v17 }
 0x299   :  { %v548_v26 = vpop.permute.xlu1 %547 }
 0x29a   :  { %v543_v29 = vpop.permute.xlu0 %542  ;;  %v562_v31 = vmul.f32 %v548_v26, %v1412_v37  ;;  %v563_v32 = vmul.f32 %v548_v26, %v1408_v35  ;;  %v565_v37 = vmul.f32 %v553_v23, %v1424_v53  ;;  %v803_v53 = vmul.f32 %v553_v23, %v1432_v60 }
 0x29b   :  { %v560_v33 = vmul.f32 %v543_v29, %v1404_v25  ;;  %v561_v34 = vmul.f32 %v543_v29, %v1402_v24  ;;  %v804_v24 = vmul.f32 %v558_v27, %v1456_v14  ;;  %v800_v62 = vmul.f32 %v548_v26, %v1422_v51 }
 0x29c   :  { %v801_v17 = vmul.f32 %v548_v26, %v1420_v48  ;;  %v798_v0 = vmul.f32 %v543_v29, %v1414_v38  ;;  %v799_v1 = vmul.f32 %v543_v29, %v1410_v36  ;;  %v1266_v36 = vmov 3  }
 0x29d   :  { %1223 = vset.pattern.permute.xlu1 %v1266_v36  ;;  %1224 = vset.pattern.permute.xlu0 %v1266_v36 }
 0x2fa   :  { %v581_v28 = vpop.permute.xlu1 %580 }
 0x2fb   :  { %v592_v54 = vadd.f32 %v581_v28, %v564_v47  ;;  %v593_v20 = vadd.f32 %v581_v28, %v565_v37  ;;  %v810_v14 = vadd.f32 %v802_v57, %v581_v28  ;;  %v811_v63 = vadd.f32 %v803_v53, %v581_v28 }
 0x302   :  { %v586_v30 = vpop.permute.xlu1 %585 }
 0x303   :  { %v594_v49 = vadd.f32 %v586_v30, %v566_v43  ;;  %v595_v35 = vadd.f32 %v586_v30, %v567_v44  ;;  %v812_v16 = vadd.f32 %v804_v24, %v586_v30  ;;  %v813_v55 = vadd.f32 %v805_v52, %v586_v30  ;;  %v1238_v43 = vld [vmem:[%s1726_s2 + $0x8] sm:$0xff]  }
 0x305   :  { %v599_v56 = vpack.c.bf16 %v595_v35, %v593_v20  ;;  %v598_v59 = vpack.c.bf16 %v594_v49, %v592_v54  ;;  %v817_v3 = vpack.c.bf16 %v813_v55, %v811_v63  ;;  %v816_v58 = vpack.c.bf16 %v812_v16, %v810_v14 }
 0x306   :  { %v571_v40 = vpop.permute.xlu0 %570 }
 0x307   :  { %v576_v39 = vpop.permute.xlu1 %575  ;;  %v588_v45 = vadd.f32 %v571_v40, %v560_v33  ;;  %v589_v46 = vadd.f32 %v571_v40, %v561_v34  ;;  %v806_v5 = vadd.f32 %v798_v0, %v571_v40  ;;  %v807_v6 = vadd.f32 %v799_v1, %v571_v40  ;;  %v1235_v33 = vld [vmem:[%s1726_s2] sm:$0xff]  }
 0x308   :  { %v590_v41 = vadd.f32 %v576_v39, %v562_v31  ;;  %v591_v42 = vadd.f32 %v576_v39, %v563_v32  ;;  %v808_v4 = vadd.f32 %v800_v62, %v576_v39  ;;  %v809_v60 = vadd.f32 %v801_v17, %v576_v39 }
 0x30a   :  { %v1502_v50 = vpack.c.bf16 %v591_v42, %v589_v46  ;;  %v1504_v25 = vpack.c.bf16 %v590_v41, %v588_v45  ;;  %v815_v61 = vpack.c.bf16 %v809_v60, %v807_v6  ;;  %v814_v51 = vpack.c.bf16 %v808_v4, %v806_v5  ;;  %v1236_v41 = vld [vmem:[%s1726_s2] sm:$0xff]   ;;  %v1237_v42 = vld [vmem:[%s1726_s2 + $0x8] sm:$0xff]  }
 0x30c   :  { %626 = vrot.lane.b32.xlu0 %v1502_v50, %s1264_s1  ;;  %624 = vrot.lane.b32.xlu1 %v1504_v25, %s1264_s1 }
 0x310   :  { %630 = vrot.lane.b32.xlu0 %v599_v56, %s1264_s1  ;;  %628 = vrot.lane.b32.xlu1 %v598_v59, %s1264_s1 }
 0x314   :  { %846 = vrot.lane.b32.xlu0 %v817_v3, %s1264_s1  ;;  %844 = vrot.lane.b32.xlu1 %v816_v58, %s1264_s1 }
 0x318   :  { %842 = vrot.lane.b32.xlu0 %v815_v61, %s1264_s1  ;;  %840 = vrot.lane.b32.xlu1 %v814_v51, %s1264_s1 }
 0x31c   :  { %606 = vrot.lane.b32.xlu0 %v1502_v50, %s1265_s10  ;;  %604 = vrot.lane.b32.xlu1 %v1504_v25, %s1265_s10 }
 0x320   :  { %610 = vrot.lane.b32.xlu0 %v599_v56, %s1265_s10  ;;  %608 = vrot.lane.b32.xlu1 %v598_v59, %s1265_s10 }
 0x324   :  { %828 = vrot.lane.b32.xlu0 %v817_v3, %s1265_s10  ;;  %826 = vrot.lane.b32.xlu1 %v816_v58, %s1265_s10 }
 0x328   :  { %824 = vrot.lane.b32.xlu0 %v815_v61, %s1265_s10  ;;  %822 = vrot.lane.b32.xlu1 %v814_v51, %s1265_s10 }
 0x32c   :  { %649 = vperm.xlu1 %1223, %v1339_v11   ;;  %653 = vperm.xlu0 %1224, %v1344_v12  }
 0x330   :  { %657 = vperm.xlu1 %1223, %v1332_v10  }
 0x334   :  { %661 = vperm.xlu1 %1223, %v1327_v9  }
 0x37e   :  { %v627_v38 = vpop.permute.xlu0 %626  ;;  %v625_v48 = vpop.permute.xlu1 %624 }
 0x37f   :  { %v633_v12 = vsel %vm632_vm0, %v625_v48, %v627_v38 }
 0x382   :  { %v631_v7 = vpop.permute.xlu0 %630  ;;  %v629_v8 = vpop.permute.xlu1 %628 }
 0x383   :  { %v634_v13 = vsel %vm632_vm0, %v629_v8, %v631_v7  ;;  %1165 = vmatprep.subr.msk.bf16.mxu0 %vm632_vm0, %v631_v7 }
 0x384   :  { %686 = vmatpush1.bf16.msra.mxu0 %v634_v13 }
 0x385   :  { %1166 = vmatprep.subr.msk.bf16.mxu0 %vm632_vm0, %v627_v38 }
 0x386   :  { %v847_v15 = vpop.permute.xlu0 %846  ;;  %v845_v11 = vpop.permute.xlu1 %844 }
 0x387   :  { %v849_v10 = vsel %vm632_vm0, %v845_v11, %v847_v15  ;;  %1175 = vmatprep.subr.msk.bf16.mxu1 %vm632_vm0, %v847_v15 }
 0x388   :  { %688 = vmatpush1.bf16.msra.mxu0 %v633_v12  ;;  %883 = vmatpush1.bf16.msra.mxu1 %v849_v10 }
 0x389   :  { %689 = vmatprep.subr.bf16.mxu0 %v599_v56 }
 0x38a   :  { %v843_v9 = vpop.permute.xlu0 %842  ;;  %v841_v18 = vpop.permute.xlu1 %840 }
 0x38b   :  { %v848_v19 = vsel %vm632_vm0, %v841_v18, %v843_v9  ;;  %1176 = vmatprep.subr.msk.bf16.mxu1 %vm632_vm0, %v843_v9 }
 0x38c   :  { %690 = vmatpush1.bf16.msra.mxu0 %v598_v59  ;;  %885 = vmatpush1.bf16.msra.mxu1 %v848_v19 }
 0x38d   :  { %691 = vmatprep.subr.bf16.mxu0 %v1502_v50  ;;  %886 = vmatprep.subr.bf16.mxu1 %v817_v3 }
 0x38e   :  { %v607_v21 = vpop.permute.xlu0 %606  ;;  %v605_v22 = vpop.permute.xlu1 %604 }
 0x38f   :  { %v613_v29 = vsel %vm612_vm1, %v605_v22, %v607_v21 }
 0x390   :  { %692 = vmatpush1.bf16.msra.mxu0 %v1504_v25  ;;  %887 = vmatpush1.bf16.msra.mxu1 %v816_v58 }
 0x391   :  { %888 = vmatprep.subr.bf16.mxu1 %v815_v61 }
 0x392   :  { %v611_v23 = vpop.permute.xlu0 %610  ;;  %v609_v26 = vpop.permute.xlu1 %608 }
 0x393   :  { %v614_v28 = vsel %vm612_vm1, %v609_v26, %v611_v23 }
 0x394   :  { %693 = vmatprep.subr.bf16.mxu0 %v614_v28  ;;  %889 = vmatpush1.bf16.msra.mxu1 %v814_v51 }
 0x395   :  { %1168 = vmatpush1.bf16.msk.msra.mxu0 %vm1533_vm2, %v609_v26 }
 0x396   :  { %v829_v30 = vpop.permute.xlu0 %828  ;;  %695 = vmatprep.subr.bf16.mxu0 %v613_v29  ;;  %v827_v31 = vpop.permute.xlu1 %826 }
 0x397   :  { %v831_v32 = vsel %vm612_vm1, %v827_v31, %v829_v30 }
 0x398   :  { %890 = vmatprep.subr.bf16.mxu1 %v831_v32 }
 0x399   :  { %1170 = vmatpush1.bf16.msk.msra.mxu0 %vm1533_vm2, %v605_v22  ;;  %1178 = vmatpush1.bf16.msk.msra.mxu1 %vm1533_vm2, %v827_v31 }
 0x39a   :  { %v825_v34 = vpop.permute.xlu0 %824  ;;  %v823_v39 = vpop.permute.xlu1 %822 }
 0x39b   :  { %v830_v40 = vsel %vm612_vm1, %v823_v39, %v825_v34 }
 0x39c   :  { %1171 = vmatmul.mubr.msk.bf16.vlgmr.msra.gmra.mxu0 %vm674_vm3, %v1235_v33  ;;  %892 = vmatprep.subr.bf16.mxu1 %v830_v40 }
 0x39d   :  { %1180 = vmatpush1.bf16.msk.msra.mxu1 %vm1533_vm2, %v823_v39  ;;  %723 = vmatprep.mubr.bf16.mxu0 %v1259_v2 }
 0x3a0   :  { %1181 = vmatmul.mubr.msk.bf16.vlgmr.msra.gmra.mxu1 %vm674_vm3, %v1236_v41 }
 0x3a1   :  { %920 = vmatprep.mubr.bf16.mxu1 %v1259_v2 }
 0x3a4   :  { %1172 = vmatmul.mubr.msk.bf16.gmra.mxu0 %vm674_vm3, %v1237_v42 }
 0x3a7   :  { %v650_v44 = vpop.permute.xlu1 %649  ;;  %v654_v54 = vpop.permute.xlu0 %653 }
 0x3a8   :  { %1182 = vmatmul.mubr.msk.bf16.gmra.mxu1 %vm674_vm3, %v1238_v43 }
 0x3ab   :  { %v658_v51 = vpop.permute.xlu1 %657 }
 0x3af   :  { %v662_v28 = vpop.permute.xlu1 %661 }
 0x45c   :  { %v715_v45 = vpop.f32.mrf.mxu0 }
 0x45d   :  { %v716_v46 = vadd.f32 %v715_v45, %v650_v44 }
 0x45e   :  { %v717_v47 = vpop.f32.mrf.mxu0 }
 0x45f   :  { %v718_v37 = vadd.f32 %v717_v47, %v650_v44  ;;  %v1563_v49 = vmax.f32 %v716_v46, 0.0 }
 0x460   :  { %v719_v35 = vpop.f32.mrf.mxu0  ;;  %v912_v50 = vpop.f32.mrf.mxu1 }
 0x461   :  { %v1565_v25 = vmax.f32 %v718_v37, 0.0  ;;  %v913_v24 = vadd.f32 %v912_v50, %v650_v44  ;;  %v720_v59 = vadd.f32 %v719_v35, %v654_v54  ;;  %v766_v3 = vmul.f32 %v1563_v49, %v1563_v49 }
 0x462   :  { %v721_v52 = vpop.f32.mrf.mxu0  ;;  %v914_v2 = vpop.f32.mrf.mxu1 }
 0x463   :  { %v915_v20 = vadd.f32 %v914_v2, %v650_v44  ;;  %v722_v57 = vadd.f32 %v721_v52, %v654_v54  ;;  %v750_v16 = vadd.f32 %v1565_v25, %v1563_v49  ;;  %v1571_v62 = vmax.f32 %v913_v24, 0.0 }
 0x464   :  { %v916_v53 = vpop.f32.mrf.mxu1  ;;  %v725_v56 = vpop.f32.mrf.mxu0  ;;  %v767_v58 = vmul.f32 %v1565_v25, %v1565_v25  ;;  %v1583_v6 = vmax.f32 %v720_v59, 0.0 }
 0x465   :  { %v1569_v55 = vmax.f32 %v915_v20, 0.0  ;;  %v917_v14 = vadd.f32 %v916_v53, %v654_v54  ;;  %751 = vadd.xlane.f32.xlu0 %v750_v16  ;;  %v1573_v0 = vmax.f32 %v722_v57, 0.0  ;;  %v964_v15 = vmul.f32 %v1571_v62, %v1571_v62 }
 0x466   :  { %v918_v63 = vpop.f32.mrf.mxu1  ;;  %v727_v4 = vpop.f32.mrf.mxu0  ;;  %v774_v36 = vadd.f32 %v767_v58, %v766_v3  ;;  %v768_v11 = vmul.f32 %v1583_v6, %v1583_v6  ;;  %v726_v21 = vadd.f32 %v725_v56, %v658_v51 }
 0x467   :  { %v919_v17 = vadd.f32 %v918_v63, %v654_v54  ;;  %v948_v1 = vadd.f32 %v1569_v55, %v1571_v62  ;;  %v1585_v61 = vmax.f32 %v917_v14, 0.0  ;;  %v965_v48 = vmul.f32 %v1569_v55, %v1569_v55 }
 0x468   :  { %v922_v5 = vpop.f32.mrf.mxu1  ;;  %v769_v7 = vmul.f32 %v1573_v0, %v1573_v0  ;;  %v729_v8 = vpop.f32.mrf.mxu0  ;;  %v728_v12 = vadd.f32 %v727_v4, %v658_v51  ;;  %v753_v32 = vadd.f32 %v1573_v0, %v1583_v6  ;;  %v1607_v34 = vmax.f32 %v726_v21, 0.0 }
 0x469   :  { %v1581_v60 = vmax.f32 %v919_v17, 0.0  ;;  %949 = vadd.xlane.f32.xlu1 %v948_v1  ;;  %v972_v9 = vadd.f32 %v965_v48, %v964_v15  ;;  %v923_v26 = vadd.f32 %v922_v5, %v658_v51  ;;  %v966_v27 = vmul.f32 %v1585_v61, %v1585_v61 }
 0x46a   :  { %v924_v13 = vpop.f32.mrf.mxu1  ;;  %v777_v18 = vadd.f32 %v769_v7, %v768_v11  ;;  %v731_v22 = vpop.f32.mrf.mxu0  ;;  %v1601_v29 = vmax.f32 %v728_v12, 0.0  ;;  %v730_v40 = vadd.f32 %v729_v8, %v662_v28  ;;  %v770_v35 = vmul.f32 %v1607_v34, %v1607_v34 }
 0x46b   :  { %v951_v38 = vadd.f32 %v1581_v60, %v1585_v61  ;;  %v925_v10 = vadd.f32 %v924_v13, %v658_v51  ;;  %v967_v19 = vmul.f32 %v1581_v60, %v1581_v60  ;;  %v732_v30 = vadd.f32 %v731_v22, %v662_v28 }
 0x46c   :  { %v926_v23 = vpop.f32.mrf.mxu1  ;;  %v1609_v41 = vmax.f32 %v923_v26, 0.0  ;;  %v756_v42 = vadd.f32 %v1601_v29, %v1607_v34  ;;  %v771_v46 = vmul.f32 %v1601_v29, %v1601_v29  ;;  %v1619_v47 = vmax.f32 %v730_v40, 0.0 }
 0x46d   :  { %775 = vadd.xlane.f32.xlu1 %v774_v36  ;;  %952 = vadd.xlane.f32.xlu0 %v951_v38  ;;  %v1603_v31 = vmax.f32 %v925_v10, 0.0  ;;  %v975_v33 = vadd.f32 %v967_v19, %v966_v27  ;;  %v1613_v43 = vmax.f32 %v732_v30, 0.0  ;;  %v927_v37 = vadd.f32 %v926_v23, %v662_v28 }
 0x46e   :  { %v928_v39 = vpop.f32.mrf.mxu1  ;;  %v780_v24 = vadd.f32 %v771_v46, %v770_v35  ;;  %v968_v20 = vmul.f32 %v1609_v41, %v1609_v41  ;;  %v772_v56 = vmul.f32 %v1619_v47, %v1619_v47  ;;  %v1267_v1 = vmov 4  }
 0x46f   :  { %v929_v44 = vadd.f32 %v928_v39, %v662_v28  ;;  %v954_v45 = vadd.f32 %v1603_v31, %v1609_v41  ;;  %v759_v52 = vadd.f32 %v1613_v43, %v1619_v47  ;;  %v969_v2 = vmul.f32 %v1603_v31, %v1603_v31  ;;  %1225 = vset.pattern.permute.xlu0 %v1267_v1 }
 0x470   :  { %v1629_v54 = vmax.f32 %v927_v37, 0.0  ;;  %v773_v16 = vmul.f32 %v1613_v43, %v1613_v43  ;;  %1226 = vset.pattern.permute.xlu1 %v1267_v1 }
 0x471   :  { %973 = vadd.xlane.f32.xlu1 %v972_v9  ;;  %778 = vadd.xlane.f32.xlu0 %v777_v18  ;;  %v1623_v50 = vmax.f32 %v929_v44, 0.0  ;;  %v978_v57 = vadd.f32 %v969_v2, %v968_v20 }
 0x472   :  { %v783_v59 = vadd.f32 %v773_v16, %v772_v56  ;;  %v970_v63 = vmul.f32 %v1629_v54, %v1629_v54 }
 0x473   :  { %v957_v53 = vadd.f32 %v1623_v50, %v1629_v54  ;;  %v971_v14 = vmul.f32 %v1623_v50, %v1623_v50 }
 0x475   :  { %754 = vadd.xlane.f32.xlu1 %v753_v32  ;;  %976 = vadd.xlane.f32.xlu0 %v975_v33  ;;  %v981_v17 = vadd.f32 %v971_v14, %v970_v63  ;;  %v1255_v14 = vld [vmem:[%s1725_s3] sm:$0xff] }
 0x479   :  { %955 = vadd.xlane.f32.xlu1 %v954_v45  ;;  %757 = vadd.xlane.f32.xlu0 %v756_v42 }
 0x47d   :  { %781 = vadd.xlane.f32.xlu1 %v780_v24  ;;  %760 = vadd.xlane.f32.xlu0 %v759_v52 }
 0x481   :  { %979 = vadd.xlane.f32.xlu1 %v978_v57  ;;  %958 = vadd.xlane.f32.xlu0 %v957_v53 }
 0x485   :  { %784 = vadd.xlane.f32.xlu0 %v783_v59 }
 0x489   :  { %982 = vadd.xlane.f32.xlu0 %v981_v17 }
 0x4ee   :  { %v752_v3 = vpop.xlane.xlu0 %751 }
 0x4f2   :  { %v950_v58 = vpop.xlane.xlu1 %949 }
 0x4f3   :  { %v960_v4 = vadd.f32 %v950_v58, %v752_v3 }
 0x4f5   :  { %v988_v36 = vmul.f32 0.001953125, %v960_v4 }
 0x4f6   :  { %v953_v5 = vpop.xlane.xlu0 %952  ;;  %v776_v51 = vpop.xlane.xlu1 %775 }
 0x4f7   :  { %v996_v8 = vmul.f32 %v988_v36, %v988_v36 }
 0x4fa   :  { %v779_v38 = vpop.xlane.xlu0 %778  ;;  %v974_v48 = vpop.xlane.xlu1 %973 }
 0x4fb   :  { %v984_v7 = vadd.f32 %v974_v48, %v776_v51 }
 0x4fd   :  { %v992_v13 = vmul.f32 0.001953125, %v984_v7 }
 0x4fe   :  { %v977_v15 = vpop.xlane.xlu0 %976  ;;  %v755_v11 = vpop.xlane.xlu1 %754 }
 0x4ff   :  { %v1000_v12 = vsub.f32 %v992_v13, %v996_v8  ;;  %v985_v10 = vadd.f32 %v977_v15, %v779_v38  ;;  %v961_v9 = vadd.f32 %v953_v5, %v755_v11  ;;  %v1256_v5 = vld [vmem:[%s1725_s3 + $0x8] sm:$0xff] }
 0x501   :  { %v1004_v18 = vmax.f32 %v1000_v12, 0.0  ;;  %v989_v19 = vmul.f32 0.001953125, %v961_v9  ;;  %v993_v26 = vmul.f32 0.001953125, %v985_v10  ;;  %v1258_v12 = vld [vmem:[%s1725_s3 + $0x18] sm:$0xff] }
 0x502   :  { %v758_v21 = vpop.xlane.xlu0 %757  ;;  %v956_v22 = vpop.xlane.xlu1 %955 }
 0x503   :  { %v1008_v23 = vadd.f32 1e-05, %v1004_v18  ;;  %v997_v27 = vmul.f32 %v989_v19, %v989_v19  ;;  %v962_v30 = vadd.f32 %v956_v22, %v758_v21  ;;  %v1268_v18 = vmov 5  }
 0x505   :  { %1247 = vrsqrt.f32 %v1008_v23  ;;  %v1001_v28 = vsub.f32 %v993_v26, %v997_v27  ;;  %v990_v42 = vmul.f32 0.001953125, %v962_v30 }
 0x506   :  { %v761_v32 = vpop.xlane.xlu0 %760  ;;  %v782_v33 = vpop.xlane.xlu1 %781 }
 0x507   :  { %v1005_v39 = vmax.f32 %v1001_v28, 0.0  ;;  %v998_v37 = vmul.f32 %v990_v42, %v990_v42 }
 0x509   :  { %v1009_v40 = vadd.f32 1e-05, %v1005_v39 }
 0x50a   :  { %v959_v44 = vpop.xlane.xlu0 %958  ;;  %v980_v45 = vpop.xlane.xlu1 %979 }
 0x50b   :  { %1249 = vrsqrt.f32 %v1009_v40  ;;  %v986_v46 = vadd.f32 %v980_v45, %v782_v33  ;;  %v963_v35 = vadd.f32 %v959_v44, %v761_v32 }
 0x50d   :  { %v994_v24 = vmul.f32 0.001953125, %v986_v46  ;;  %v991_v20 = vmul.f32 0.001953125, %v963_v35 }
 0x50e   :  { %v785_v52 = vpop.xlane.xlu0 %784 }
 0x50f   :  { %v1002_v2 = vsub.f32 %v994_v24, %v998_v37  ;;  %v999_v17 = vmul.f32 %v991_v20, %v991_v20 }
 0x511   :  { %v1006_v57 = vmax.f32 %v1002_v2, 0.0 }
 0x512   :  { %v1248_v53 = vpop.eup %1247  ;;  %v983_v16 = vpop.xlane.xlu0 %982 }
 0x513   :  { %v1010_v56 = vadd.f32 1e-05, %v1006_v57  ;;  %v987_v59 = vadd.f32 %v983_v16, %v785_v52  ;;  %v1016_v63 = vmul.f32 %v1255_v14, %v1248_v53 }
 0x515   :  { %1251 = vrsqrt.f32 %v1010_v56  ;;  %v995_v1 = vmul.f32 0.001953125, %v987_v59  ;;  %v1020_v3 = vmul.f32 %v1016_v63, %v988_v36  ;;  %v1257_v36 = vld [vmem:[%s1725_s3 + $0x10] sm:$0xff] }
 0x517   :  { %v1003_v58 = vsub.f32 %v995_v1, %v999_v17  ;;  %1028 = vrot.lane.b32.xlu1 %v1020_v3, %s1261_s0 }
 0x518   :  { %v1250_v4 = vpop.eup %1249 }
 0x519   :  { %v1017_v51 = vmul.f32 %v1256_v5, %v1250_v4  ;;  %v1007_v38 = vmax.f32 %v1003_v58, 0.0 }
 0x51b   :  { %v1021_v48 = vmul.f32 %v1017_v51, %v989_v19  ;;  %v1011_v7 = vadd.f32 1e-05, %v1007_v38 }
 0x51d   :  { %1253 = vrsqrt.f32 %v1011_v7  ;;  %1030 = vrot.lane.b32.xlu0 %v1021_v48, %s1261_s0 }
 0x521   :  { %1054 = vperm.xlu0 %1225, %v1016_v63  }
 0x522   :  { %v1252_v8 = vpop.eup %1251 }
 0x523   :  { %v1018_v13 = vmul.f32 %v1257_v36, %v1252_v8 }
 0x525   :  { %v1022_v15 = vmul.f32 %v1018_v13, %v990_v42 }
 0x527   :  { %1032 = vrot.lane.b32.xlu1 %v1022_v15, %s1261_s0 }
 0x52a   :  { %v1254_v11 = vpop.eup %1253 }
 0x52b   :  { %v1019_v10 = vmul.f32 %v1258_v12, %v1254_v11 }
 0x52d   :  { %1069 = vperm.xlu0 %1225, %v1019_v10   ;;  %v1023_v9 = vmul.f32 %v1019_v10, %v991_v20 }
 0x52f   :  { %1034 = vrot.lane.b32.xlu1 %v1023_v9, %s1261_s0 }
 0x531   :  { %1228 = vset.pattern.permute.xlu0 %v1268_v18 }
 0x533   :  { %1059 = vperm.xlu1 %1226, %v1017_v51  }
 0x537   :  { %1064 = vperm.xlu1 %1226, %v1018_v13  }
 0x53b   :  { %1227 = vset.pattern.permute.xlu1 %v1268_v18 }
 0x589   :  { %v1029_v19 = vpop.permute.xlu1 %1028 }
 0x58a   :  { %v1040_v21 = vsub.f32 %v1255_v14, %v1029_v19 }
 0x58c   :  { %1082 = vperm.xlu1 %1227, %v1040_v21  }
 0x58f   :  { %v1031_v22 = vpop.permute.xlu0 %1030 }
 0x590   :  { %v1041_v23 = vsub.f32 %v1256_v5, %v1031_v22 }
 0x592   :  { %1087 = vperm.xlu0 %1228, %v1041_v23  }
 0x599   :  { %v1033_v26 = vpop.permute.xlu1 %1032 }
 0x59a   :  { %v1042_v27 = vsub.f32 %v1257_v36, %v1033_v26 }
 0x59c   :  { %1092 = vperm.xlu1 %1227, %v1042_v27   ;;  %v1055_v33 = vpop.permute.xlu0 %1054 }
 0x59d   :  { %v1072_v40 = vmul.f32 %v1055_v33, %v1563_v49  ;;  %v1073_v42 = vmul.f32 %v1055_v33, %v1565_v25  ;;  %v1124_v44 = vmul.f32 %v1055_v33, %v1571_v62  ;;  %v1125_v45 = vmul.f32 %v1055_v33, %v1569_v55 }
 0x5a1   :  { %v1035_v28 = vpop.permute.xlu1 %1034 }
 0x5a2   :  { %v1043_v30 = vsub.f32 %v1258_v12, %v1035_v28 }
 0x5a4   :  { %1097 = vperm.xlu1 %1227, %v1043_v30  }
 0x5a8   :  { %v1070_v2 = vpop.permute.xlu0 %1069 }
 0x5ae   :  { %v1060_v32 = vpop.permute.xlu1 %1059 }
 0x5af   :  { %v1074_v49 = vmul.f32 %v1060_v32, %v1583_v6  ;;  %v1075_v25 = vmul.f32 %v1060_v32, %v1573_v0  ;;  %v1126_v55 = vmul.f32 %v1060_v32, %v1585_v61  ;;  %v1127_v62 = vmul.f32 %v1060_v32, %v1581_v60 }
 0x5b2   :  { %v1065_v39 = vpop.permute.xlu1 %1064 }
 0x5b3   :  { %v1076_v0 = vmul.f32 %v1065_v39, %v1607_v34  ;;  %v1077_v60 = vmul.f32 %v1065_v39, %v1601_v29  ;;  %v1128_v6 = vmul.f32 %v1065_v39, %v1609_v41  ;;  %v1129_v61 = vmul.f32 %v1065_v39, %v1603_v31 }
 0x5b4   :  { %v1078_v29 = vmul.f32 %v1070_v2, %v1619_v47  ;;  %v1079_v31 = vmul.f32 %v1070_v2, %v1613_v43  ;;  %v1130_v34 = vmul.f32 %v1070_v2, %v1629_v54  ;;  %v1131_v41 = vmul.f32 %v1070_v2, %v1623_v50 }
 0x607   :  { %v1083_v46 = vpop.permute.xlu1 %1082 }
 0x608   :  { %v1100_v37 = vadd.f32 %v1083_v46, %v1072_v40  ;;  %v1101_v35 = vadd.f32 %v1083_v46, %v1073_v42  ;;  %v1132_v24 = vadd.f32 %v1124_v44, %v1083_v46  ;;  %v1133_v52 = vadd.f32 %v1125_v45, %v1083_v46 }
 0x60a   :  { %1108 = vst [vmem:[%s1727_s4] sm:$0xff] %v1100_v37  ;;  %1109 = vst [vmem:[%s1727_s4 + $0x8] sm:$0xff] %v1101_v35 }
 0x60b   :  { %1199 = vst [vmem:[%s1727_s4 + $0x40] sm:$0xff] %v1132_v24  ;;  %1200 = vst [vmem:[%s1727_s4 + $0x48] sm:$0xff] %v1133_v52 }
 0x60d   :  { %v1088_v20 = vpop.permute.xlu0 %1087 }
 0x60e   :  { %v1102_v57 = vadd.f32 %v1088_v20, %v1074_v49  ;;  %v1103_v53 = vadd.f32 %v1088_v20, %v1075_v25  ;;  %v1134_v16 = vadd.f32 %v1126_v55, %v1088_v20  ;;  %v1135_v56 = vadd.f32 %v1127_v62, %v1088_v20 }
 0x610   :  { %1110 = vst [vmem:[%s1727_s4 + $0x10] sm:$0xff] %v1102_v57  ;;  %1111 = vst [vmem:[%s1727_s4 + $0x18] sm:$0xff] %v1103_v53 }
 0x611   :  { %1201 = vst [vmem:[%s1727_s4 + $0x50] sm:$0xff] %v1134_v16  ;;  %1202 = vst [vmem:[%s1727_s4 + $0x58] sm:$0xff] %v1135_v56 }
 0x617   :  { %v1093_v59 = vpop.permute.xlu1 %1092 }
 0x618   :  { %v1104_v14 = vadd.f32 %v1093_v59, %v1076_v0  ;;  %v1105_v63 = vadd.f32 %v1093_v59, %v1077_v60  ;;  %v1136_v17 = vadd.f32 %v1128_v6, %v1093_v59  ;;  %v1137_v1 = vadd.f32 %v1129_v61, %v1093_v59 }
 0x61a   :  { %1112 = vst [vmem:[%s1727_s4 + $0x20] sm:$0xff] %v1104_v14  ;;  %1113 = vst [vmem:[%s1727_s4 + $0x28] sm:$0xff] %v1105_v63 }
 0x61b   :  { %1203 = vst [vmem:[%s1727_s4 + $0x60] sm:$0xff] %v1136_v17  ;;  %1204 = vst [vmem:[%s1727_s4 + $0x68] sm:$0xff] %v1137_v1 }
 0x61f   :  { %v1098_v3 = vpop.permute.xlu1 %1097 }
 0x620   :  { %v1106_v58 = vadd.f32 %v1098_v3, %v1078_v29  ;;  %v1107_v4 = vadd.f32 %v1098_v3, %v1079_v31  ;;  %v1138_v5 = vadd.f32 %v1130_v34, %v1098_v3  ;;  %v1139_v51 = vadd.f32 %v1131_v41, %v1098_v3 }
 0x622   :  { %1114 = vst [vmem:[%s1727_s4 + $0x30] sm:$0xff] %v1106_v58  ;;  %1115 = vst [vmem:[%s1727_s4 + $0x38] sm:$0xff] %v1107_v4 }
 0x623   :  { %1205 = vst [vmem:[%s1727_s4 + $0x70] sm:$0xff] %v1138_v5  ;;  %1206 = vst [vmem:[%s1727_s4 + $0x78] sm:$0xff] %v1139_v51 }

</bundles_post_ra>
